<compile_context>
chip_gen: v7x
topology: tpu7x:2x2x1
jax: 0.10.0
libtpu: 0.0.40
codegen_flags: <defaults>
</compile_context>

<pallas_src>
import math

import jax
import jax.numpy as jnp
from jax.experimental import pallas as pl
from jax.experimental.pallas import tpu as pltpu

LANE = 128  # TPU lane width: feature/class dims padded to a multiple of this.
VMEM_LIMIT_BYTES = 32 * 1024 * 1024  # ample for the tiles below, < physical on all gens


# ----------------------------------------------------------------------------
# helpers
# ----------------------------------------------------------------------------
def _round_up(x, m):
    return ((x + m - 1) // m) * m


def _pad2d(x, rows, cols):
    r, c = x.shape
    return jnp.pad(x, ((0, rows - r), (0, cols - c)))


def _pad_row(v, cols):
    v = v.reshape(1, -1).astype(jnp.float32)
    return jnp.pad(v, ((0, 0), (0, cols - v.shape[1])))


# ----------------------------------------------------------------------------
# Kernel 1: one GINConv layer (propagation + fused MLP epilogue + outer ReLU)
#   grid = (num_row_tiles, num_k_tiles); K (reduction over source nodes) is last.
# ----------------------------------------------------------------------------
def gin_layer_kernel(a_ref, x_ref, xs_ref, w1t_ref, sc1_ref, sh1_ref,
                     w2t_ref, b2_ref, o_ref, acc_ref):
    k = pl.program_id(1)

    @pl.when(k == 0)
    def _init():
        acc_ref[...] = jnp.zeros_like(acc_ref)

    # sum aggregation over neighbours: acc += A[i-tile, k-tile] @ X[k-tile, :]
    acc_ref[...] += jnp.dot(a_ref[...], x_ref[...],
                            preferred_element_type=jnp.float32)

    @pl.when(k == pl.num_programs(1) - 1)
    def _epilogue():
        # GIN: (1 + eps) * x_i + sum_j x_j, with eps = 0 (train_eps=False)
        agg = acc_ref[...] + xs_ref[...].astype(jnp.float32)
        # inner MLP([cin, h, h]): Linear -> BatchNorm (folded to scale/shift) -> ReLU
        h = jnp.dot(agg, w1t_ref[...], preferred_element_type=jnp.float32)
        h = h * sc1_ref[...] + sh1_ref[...]
        h = jnp.maximum(h, 0.0)            # act (inner dropout p=0.0 -> identity)
        # plain last Linear of the inner MLP
        z = jnp.dot(h, w2t_ref[...], preferred_element_type=jnp.float32) + b2_ref[...]
        # conv(x, edge_index).relu()
        o_ref[...] = jnp.maximum(z, 0.0).astype(o_ref.dtype)


def gin_layer_pallas(a_pad, x_pad, w1, b1, gamma, beta, mean, var, w2, b2,
                     *, tm, tk, bn_eps=1e-5, matmul_dtype=jnp.float32):
    """One GINConv(nn=MLP([cin, h, h]), eps=0) + ReLU on padded operands."""
    n_p, c_p = x_pad.shape
    hidden = w1.shape[0]
    h_p = _round_up(hidden, LANE)

    # Fold Linear1 bias + BatchNorm (eval) into a per-channel scale/shift:
    #   BN(agg @ W1^T + b1) = (agg @ W1^T) * s + ((b1 - mean) * s + beta)
    s = gamma / jnp.sqrt(var + bn_eps)
    w1t = _pad2d(w1.T.astype(jnp.float32), c_p, h_p)          # (Cp, Hp)
    sc1 = _pad_row(s, h_p)                                     # (1, Hp)
    sh1 = _pad_row((b1 - mean) * s + beta, h_p)                # (1, Hp)
    w2t = _pad2d(w2.T.astype(jnp.float32), h_p, h_p)           # (Hp, Hp)
    b2r = _pad_row(b2, h_p)                                    # (1, Hp)

    a_in = a_pad.astype(matmul_dtype)
    x_in = x_pad.astype(matmul_dtype)

    grid = (n_p // tm, n_p // tk)

    return pl.pallas_call(
        gin_layer_kernel,
        out_shape=jax.ShapeDtypeStruct((n_p, h_p), jnp.float32),
        grid_spec=pltpu.PrefetchScalarGridSpec(
            num_scalar_prefetch=0,
            grid=grid,
            in_specs=[
                pl.BlockSpec((tm, tk), lambda i, k: (i, k)),      # A row/col tile
                pl.BlockSpec((tk, c_p), lambda i, k: (k, 0)),     # X source rows
                pl.BlockSpec((tm, c_p), lambda i, k: (i, 0)),     # X self rows
                pl.BlockSpec((c_p, h_p), lambda i, k: (0, 0)),    # W1^T
                pl.BlockSpec((1, h_p), lambda i, k: (0, 0)),      # BN scale
                pl.BlockSpec((1, h_p), lambda i, k: (0, 0)),      # BN shift (+ b1)
                pl.BlockSpec((h_p, h_p), lambda i, k: (0, 0)),    # W2^T
                pl.BlockSpec((1, h_p), lambda i, k: (0, 0)),      # b2
            ],
            out_specs=pl.BlockSpec((tm, h_p), lambda i, k: (i, 0)),
            scratch_shapes=[pltpu.VMEM((tm, c_p), jnp.float32)],  # f32 accumulator
        ),
        compiler_params=pltpu.CompilerParams(
            dimension_semantics=("parallel", "arbitrary"),
            vmem_limit_bytes=VMEM_LIMIT_BYTES,
        ),
    )(a_in, x_in, x_in, w1t, sc1, sh1, w2t, b2r)


# ----------------------------------------------------------------------------
# Kernel 2: final MLP([h, h, out], norm=None, dropout=0.5)  (dropout = id at eval)
# ----------------------------------------------------------------------------
def final_mlp_kernel(x_ref, w1t_ref, b1_ref, w2t_ref, b2_ref, o_ref):
    h = jnp.dot(x_ref[...], w1t_ref[...], preferred_element_type=jnp.float32) + b1_ref[...]
    h = jnp.maximum(h, 0.0)
    # TODO(synk): dropout(p=0.5) is training-only; implemented as identity (eval mode).
    o_ref[...] = (jnp.dot(h, w2t_ref[...], preferred_element_type=jnp.float32)
                  + b2_ref[...]).astype(o_ref.dtype)


def final_mlp_pallas(x_pad, w1, b1, w2, b2, *, tm, out_channels):
    n_p, h_p = x_pad.shape
    c_out_p = _round_up(out_channels, LANE)
    w1t = _pad2d(w1.T.astype(jnp.float32), h_p, h_p)
    b1r = _pad_row(b1, h_p)
    w2t = _pad2d(w2.T.astype(jnp.float32), h_p, c_out_p)
    b2r = _pad_row(b2, c_out_p)

    return pl.pallas_call(
        final_mlp_kernel,
        out_shape=jax.ShapeDtypeStruct((n_p, c_out_p), jnp.float32),
        grid_spec=pltpu.PrefetchScalarGridSpec(
            num_scalar_prefetch=0,
            grid=(n_p // tm,),
            in_specs=[
                pl.BlockSpec((tm, h_p), lambda i: (i, 0)),
                pl.BlockSpec((h_p, h_p), lambda i: (0, 0)),
                pl.BlockSpec((1, h_p), lambda i: (0, 0)),
                pl.BlockSpec((h_p, c_out_p), lambda i: (0, 0)),
                pl.BlockSpec((1, c_out_p), lambda i: (0, 0)),
            ],
            out_specs=pl.BlockSpec((tm, c_out_p), lambda i: (i, 0)),
        ),
        compiler_params=pltpu.CompilerParams(
            dimension_semantics=("parallel",),
            vmem_limit_bytes=VMEM_LIMIT_BYTES,
        ),
    )(x_pad, w1t, b1r, w2t, b2r)


# ----------------------------------------------------------------------------
# Full GIN forward (wrapper glue: dense adjacency, padding, per-layer calls)
# ----------------------------------------------------------------------------
def gin_forward_pallas(x, edge_index, layer_params, final_params, out_channels,
                       *, tm=256, tk=512, matmul_dtype=jnp.float32):
    n = x.shape[0]
    src, dst = edge_index[0], edge_index[1]
    # GIN 'add' aggregation: out_i = sum over edges (j -> i) of x_j  =>  A[i, j] += 1
    # TODO(synk): for large sparse graphs replace this dense N x N matrix with
    # block-sparse propagation (PrefetchScalarGridSpec column-block lists / pl.when skip).
    a = jnp.zeros((n, n), jnp.float32).at[dst, src].add(1.0)

    # clamp tiles for small graphs; pad node count so both tile sizes divide it
    n128 = _round_up(n, 128)
    tm = min(tm, n128)
    tk = min(tk, n128)
    lcm = tm * tk // math.gcd(tm, tk)
    n_p = _round_up(n, lcm)

    a_pad = _pad2d(a, n_p, n_p)
    c_p = _round_up(x.shape[1], LANE)
    h_pad = _pad2d(x.astype(jnp.float32), n_p, c_p)

    for p in layer_params:
        h_pad = gin_layer_pallas(a_pad, h_pad, p["w1"], p["b1"], p["gamma"], p["beta"],
                                 p["mean"], p["var"], p["w2"], p["b2"],
                                 tm=tm, tk=tk, matmul_dtype=matmul_dtype)

    z_pad = final_mlp_pallas(h_pad, final_params["w1"], final_params["b1"],
                             final_params["w2"], final_params["b2"],
                             tm=tm, out_channels=out_channels)
    return z_pad[:n, :out_channels]


# ----------------------------------------------------------------------------
# Pure-JAX reference (f32, highest matmul precision) for correctness check
# ----------------------------------------------------------------------------
def gin_forward_ref(x, edge_index, layer_params, final_params, bn_eps=1e-5):
    n = x.shape[0]
    a = jnp.zeros((n, n), jnp.float32).at[edge_index[1], edge_index[0]].add(1.0)
    hp = jax.lax.Precision.HIGHEST
    h = x.astype(jnp.float32)
    for p in layer_params:
        agg = h + jnp.dot(a, h, precision=hp)                    # eps = 0
        y = jnp.dot(agg, p["w1"].T, precision=hp) + p["b1"]
        s = p["gamma"] / jnp.sqrt(p["var"] + bn_eps)
        y = (y - p["mean"]) * s + p["beta"]
        y = jnp.maximum(y, 0.0)
        y = jnp.dot(y, p["w2"].T, precision=hp) + p["b2"]
        h = jnp.maximum(y, 0.0)
    z = jnp.dot(h, final_params["w1"].T, precision=hp) + final_params["b1"]
    z = jnp.maximum(z, 0.0)   # dropout(0.5) identity at eval
    return jnp.dot(z, final_params["w2"].T, precision=hp) + final_params["b2"]


def _linear_init(key, fan_in, fan_out):
    kw, kb = jax.random.split(key)
    bound = 1.0 / float(fan_in) ** 0.5
    w = jax.random.uniform(kw, (fan_out, fan_in), minval=-bound, maxval=bound,
                           dtype=jnp.float32)
    b = jax.random.uniform(kb, (fan_out,), minval=-bound, maxval=bound,
                           dtype=jnp.float32)
    return w, b


if __name__ == "__main__":
    key = jax.random.PRNGKey(0)
    N, E = 1000, 4000
    in_channels, hidden_channels, out_channels = 16, 32, 4
    layers_num = 2

    key, kx, ks, kd = jax.random.split(key, 4)
    x = jax.random.normal(kx, (N, in_channels), dtype=jnp.float32)
    src = jax.random.randint(ks, (E,), 0, N, dtype=jnp.int32)
    dst = jax.random.randint(kd, (E,), 0, N, dtype=jnp.int32)
    edge_index = jnp.stack([src, dst], axis=0)  # (2, E)

    # GINConv layers: nn = MLP([cin, hidden, hidden]) = Lin -> BN -> ReLU -> Lin
    layer_params = []
    cin = in_channels
    for _ in range(layers_num):
        key, k1, k2, k3 = jax.random.split(key, 4)
        w1, b1 = _linear_init(k1, cin, hidden_channels)
        w2, b2 = _linear_init(k2, hidden_channels, hidden_channels)
        kg, kbt, km, kv = jax.random.split(k3, 4)
        gamma = jax.random.uniform(kg, (hidden_channels,), minval=0.5, maxval=1.5)
        beta = jax.random.uniform(kbt, (hidden_channels,), minval=-0.5, maxval=0.5)
        mean = 0.1 * jax.random.normal(km, (hidden_channels,))
        var = jax.random.uniform(kv, (hidden_channels,), minval=0.5, maxval=1.5)
        layer_params.append(dict(w1=w1, b1=b1, w2=w2, b2=b2,
                                 gamma=gamma, beta=beta, mean=mean, var=var))
        cin = hidden_channels

    # final MLP([hidden, hidden, out], norm=None, dropout=0.5)
    key, k4, k5 = jax.random.split(key, 3)
    fw1, fb1 = _linear_init(k4, hidden_channels, hidden_channels)
    fw2, fb2 = _linear_init(k5, hidden_channels, out_channels)
    final_params = dict(w1=fw1, b1=fb1, w2=fw2, b2=fb2)

    out = gin_forward_pallas(x, edge_index, layer_params, final_params, out_channels)
    out = jax.block_until_ready(out)

    ref = gin_forward_ref(x, edge_index, layer_params, final_params)
    assert out.shape == (N, out_channels)
    assert bool(jnp.all(jnp.isfinite(out))), "non-finite output"
    assert jnp.allclose(out, ref, atol=2e-2, rtol=2e-2), (
        "mismatch vs reference, max abs diff = %f" % float(jnp.max(jnp.abs(out - ref))))

    print("KERNEL_OK")
</pallas_src>

<mosaic_0001>
module attributes {stable_mosaic.version = 11 : i64} {
  func.func @gin_layer_kernel(%arg0: i32, %arg1: i32, %arg2: memref<256x512xf32, #tpu.memory_space<vmem>>, %arg3: memref<512x128xf32, #tpu.memory_space<vmem>>, %arg4: memref<256x128xf32, #tpu.memory_space<vmem>>, %arg5: memref<128x128xf32, #tpu.memory_space<vmem>>, %arg6: memref<1x128xf32, #tpu.memory_space<vmem>>, %arg7: memref<1x128xf32, #tpu.memory_space<vmem>>, %arg8: memref<128x128xf32, #tpu.memory_space<vmem>>, %arg9: memref<1x128xf32, #tpu.memory_space<vmem>>, %arg10: memref<256x128xf32, #tpu.memory_space<vmem>>, %arg11: memref<256x128xf32, #tpu.memory_space<vmem>>) attributes {dimension_semantics = [#tpu.dimension_semantics<parallel>, #tpu.dimension_semantics<arbitrary>], iteration_bounds = array<i64: 4, 2>, scalar_prefetch = 0 : i64, scratch_operands = 1 : i64, tpu.core_type = #tpu.core_type<tc>, window_params = [{transform_indices = @transform_0, window_bounds = array<i64: 256, 512>}, {transform_indices = @transform_1, window_bounds = array<i64: 512, 128>}, {transform_indices = @transform_2, window_bounds = array<i64: 256, 128>}, {pipeline_mode = #tpu.pipeline_mode<synchronous>, transform_indices = @transform_3, window_bounds = array<i64: 128, 128>}, {pipeline_mode = #tpu.pipeline_mode<synchronous>, transform_indices = @transform_4, window_bounds = array<i64: 1, 128>}, {pipeline_mode = #tpu.pipeline_mode<synchronous>, transform_indices = @transform_5, window_bounds = array<i64: 1, 128>}, {pipeline_mode = #tpu.pipeline_mode<synchronous>, transform_indices = @transform_6, window_bounds = array<i64: 128, 128>}, {pipeline_mode = #tpu.pipeline_mode<synchronous>, transform_indices = @transform_7, window_bounds = array<i64: 1, 128>}, {transform_indices = @transform_8, window_bounds = array<i64: 256, 128>}]} {
    %c0_i32 = arith.constant 0 : i32
    %0 = arith.cmpi eq, %arg1, %c0_i32 : i32
    %1 = arith.extui %0 : i1 to i32
    %c0_i32_0 = arith.constant 0 : i32
    %2 = arith.cmpi ne, %1, %c0_i32_0 : i32
    scf.if %2 {
      %cst_9 = arith.constant 0.000000e+00 : f32
      %12 = vector.broadcast %cst_9 : f32 to vector<256x128xf32>
      %c0_10 = arith.constant 0 : index
      %c0_11 = arith.constant 0 : index
      %13 = vector.load %arg11[%c0_10, %c0_11] : memref<256x128xf32, #tpu.memory_space<vmem>>, vector<256x128xf32>
      tpu.vector_store %arg11[%c0_10, %c0_11], %12 {strides = array<i32>} : memref<256x128xf32, #tpu.memory_space<vmem>>, vector<256x128xf32>,
    } else {
    }
    %c0 = arith.constant 0 : index
    %c0_1 = arith.constant 0 : index
    %3 = vector.load %arg11[%c0, %c0_1] : memref<256x128xf32, #tpu.memory_space<vmem>>, vector<256x128xf32>
    %c0_2 = arith.constant 0 : index
    %c0_3 = arith.constant 0 : index
    %4 = vector.load %arg2[%c0_2, %c0_3] : memref<256x512xf32, #tpu.memory_space<vmem>>, vector<256x512xf32>
    %c0_4 = arith.constant 0 : index
    %c0_5 = arith.constant 0 : index
    %5 = vector.load %arg3[%c0_4, %c0_5] : memref<512x128xf32, #tpu.memory_space<vmem>>, vector<512x128xf32>
    %cst = arith.constant dense<0.000000e+00> : vector<256x128xf32>
    %6 = tpu.matmul %4, %5, %cst {dimension_numbers = #tpu.dot_dimension_numbers<[1], [0], [0], [1], [0, 0, 1, 1], [], []>} : vector<256x512xf32>, vector<512x128xf32>, vector<256x128xf32> -> vector<256x128xf32>
    %7 = arith.addf %3, %6 : vector<256x128xf32>
    %c0_6 = arith.constant 0 : index
    %c0_7 = arith.constant 0 : index
    %8 = vector.load %arg11[%c0_6, %c0_7] : memref<256x128xf32, #tpu.memory_space<vmem>>, vector<256x128xf32>
    tpu.vector_store %arg11[%c0_6, %c0_7], %7 {strides = array<i32>} : memref<256x128xf32, #tpu.memory_space<vmem>>, vector<256x128xf32>,
    %c1_i32 = arith.constant 1 : i32
    %9 = arith.cmpi eq, %arg1, %c1_i32 : i32
    %10 = arith.extui %9 : i1 to i32
    %c0_i32_8 = arith.constant 0 : i32
    %11 = arith.cmpi ne, %10, %c0_i32_8 : i32
    scf.if %11 {
      %c0_9 = arith.constant 0 : index
      %c0_10 = arith.constant 0 : index
      %12 = vector.load %arg11[%c0_9, %c0_10] : memref<256x128xf32, #tpu.memory_space<vmem>>, vector<256x128xf32>
      %c0_11 = arith.constant 0 : index
      %c0_12 = arith.constant 0 : index
      %13 = vector.load %arg4[%c0_11, %c0_12] : memref<256x128xf32, #tpu.memory_space<vmem>>, vector<256x128xf32>
      %14 = arith.addf %12, %13 : vector<256x128xf32>
      %c0_13 = arith.constant 0 : index
      %c0_14 = arith.constant 0 : index
      %15 = vector.load %arg5[%c0_13, %c0_14] : memref<128x128xf32, #tpu.memory_space<vmem>>, vector<128x128xf32>
      %cst_15 = arith.constant dense<0.000000e+00> : vector<256x128xf32>
      %16 = tpu.matmul %14, %15, %cst_15 {dimension_numbers = #tpu.dot_dimension_numbers<[1], [0], [0], [1], [0, 0, 1, 1], [], []>} : vector<256x128xf32>, vector<128x128xf32>, vector<256x128xf32> -> vector<256x128xf32>
      %c0_16 = arith.constant 0 : index
      %c0_17 = arith.constant 0 : index
      %17 = vector.load %arg6[%c0_16, %c0_17] : memref<1x128xf32, #tpu.memory_space<vmem>>, vector<1x128xf32>
      %18 = vector.broadcast %17 : vector<1x128xf32> to vector<256x128xf32>
      %19 = arith.mulf %16, %18 : vector<256x128xf32>
      %c0_18 = arith.constant 0 : index
      %c0_19 = arith.constant 0 : index
      %20 = vector.load %arg7[%c0_18, %c0_19] : memref<1x128xf32, #tpu.memory_space<vmem>>, vector<1x128xf32>
      %21 = vector.broadcast %20 : vector<1x128xf32> to vector<256x128xf32>
      %22 = arith.addf %19, %21 : vector<256x128xf32>
      %cst_20 = arith.constant 0.000000e+00 : f32
      %23 = vector.broadcast %cst_20 : f32 to vector<256x128xf32>
      %24 = arith.maximumf %22, %23 : vector<256x128xf32>
      %c0_21 = arith.constant 0 : index
      %c0_22 = arith.constant 0 : index
      %25 = vector.load %arg8[%c0_21, %c0_22] : memref<128x128xf32, #tpu.memory_space<vmem>>, vector<128x128xf32>
      %cst_23 = arith.constant dense<0.000000e+00> : vector<256x128xf32>
      %26 = tpu.matmul %24, %25, %cst_23 {dimension_numbers = #tpu.dot_dimension_numbers<[1], [0], [0], [1], [0, 0, 1, 1], [], []>} : vector<256x128xf32>, vector<128x128xf32>, vector<256x128xf32> -> vector<256x128xf32>
      %c0_24 = arith.constant 0 : index
      %c0_25 = arith.constant 0 : index
      %27 = vector.load %arg9[%c0_24, %c0_25] : memref<1x128xf32, #tpu.memory_space<vmem>>, vector<1x128xf32>
      %28 = vector.broadcast %27 : vector<1x128xf32> to vector<256x128xf32>
      %29 = arith.addf %26, %28 : vector<256x128xf32>
      %cst_26 = arith.constant 0.000000e+00 : f32
      %30 = vector.broadcast %cst_26 : f32 to vector<256x128xf32>
      %31 = arith.maximumf %29, %30 : vector<256x128xf32>
      %c0_27 = arith.constant 0 : index
      %c0_28 = arith.constant 0 : index
      %32 = vector.load %arg10[%c0_27, %c0_28] : memref<256x128xf32, #tpu.memory_space<vmem>>, vector<256x128xf32>
      tpu.vector_store %arg10[%c0_27, %c0_28], %31 {strides = array<i32>} : memref<256x128xf32, #tpu.memory_space<vmem>>, vector<256x128xf32>,
    } else {
    }
    return
  }
  func.func @transform_0(%arg0: i32, %arg1: i32) -> (i32, i32) {
    %c0_i32 = arith.constant 0 : i32
    return %arg0, %arg1 : i32, i32
  }
  func.func @transform_1(%arg0: i32, %arg1: i32) -> (i32, i32) {
    %c0_i32 = arith.constant 0 : i32
    %c0_i32_0 = arith.constant 0 : i32
    return %arg1, %c0_i32 : i32, i32
  }
  func.func @transform_2(%arg0: i32, %arg1: i32) -> (i32, i32) {
    %c0_i32 = arith.constant 0 : i32
    %c0_i32_0 = arith.constant 0 : i32
    return %arg0, %c0_i32 : i32, i32
  }
  func.func @transform_3(%arg0: i32, %arg1: i32) -> (i32, i32) {
    %c0_i32 = arith.constant 0 : i32
    %c0_i32_0 = arith.constant 0 : i32
    %c0_i32_1 = arith.constant 0 : i32
    return %c0_i32, %c0_i32_0 : i32, i32
  }
  func.func @transform_4(%arg0: i32, %arg1: i32) -> (i32, i32) {
    %c0_i32 = arith.constant 0 : i32
    %c0_i32_0 = arith.constant 0 : i32
    %c0_i32_1 = arith.constant 0 : i32
    return %c0_i32, %c0_i32_0 : i32, i32
  }
  func.func @transform_5(%arg0: i32, %arg1: i32) -> (i32, i32) {
    %c0_i32 = arith.constant 0 : i32
    %c0_i32_0 = arith.constant 0 : i32
    %c0_i32_1 = arith.constant 0 : i32
    return %c0_i32, %c0_i32_0 : i32, i32
  }
  func.func @transform_6(%arg0: i32, %arg1: i32) -> (i32, i32) {
    %c0_i32 = arith.constant 0 : i32
    %c0_i32_0 = arith.constant 0 : i32
    %c0_i32_1 = arith.constant 0 : i32
    return %c0_i32, %c0_i32_0 : i32, i32
  }
  func.func @transform_7(%arg0: i32, %arg1: i32) -> (i32, i32) {
    %c0_i32 = arith.constant 0 : i32
    %c0_i32_0 = arith.constant 0 : i32
    %c0_i32_1 = arith.constant 0 : i32
    return %c0_i32, %c0_i32_0 : i32, i32
  }
  func.func @transform_8(%arg0: i32, %arg1: i32) -> (i32, i32) {
    %c0_i32 = arith.constant 0 : i32
    %c0_i32_0 = arith.constant 0 : i32
    return %arg0, %c0_i32 : i32, i32
  }
}

</mosaic_0001>

<bundles_post_ra>
// kernel: tpu_custom_call.1
= control target key start
LH: loop header
LB: loop body
LE: loop exit
PB: predicated region body
PF: predicated region fallthrough
CT: control target
= control target key end

     0   :  { %s4280_s0 = inlined_call_operand.hbm [shape: f32[1024,1024], index: 0, kind: input, shape index: {}]   ;;  %s4281_s1 = inlined_call_operand.hbm [shape: f32[1024,128], index: 1, kind: input, shape index: {}]   ;;  %s4282_s2 = inlined_call_operand.hbm [shape: f32[1024,128], index: 2, kind: input, shape index: {}]   ;;  %s4283_s3 = inlined_call_operand.hbm [shape: f32[128,128], index: 3, kind: input, shape index: {}]   ;;  %s4284_s4 = inlined_call_operand.hbm [shape: f32[1,128], index: 4, kind: input, shape index: {}]   ;;  %s4285_s5 = inlined_call_operand.hbm [shape: f32[1,128], index: 5, kind: input, shape index: {}]   ;;  %s4286_s6 = inlined_call_operand.hbm [shape: f32[128,128], index: 6, kind: input, shape index: {}]   ;;  %s4287_s7 = inlined_call_operand.hbm [shape: f32[1,128], index: 7, kind: input, shape index: {}]   ;;  %s4288_s8 = inlined_call_operand.hbm [shape: f32[1024,128], index: 8, kind: output, shape index: {}]  }
   0x1   :  { %4315 = sst [smem:[#allocation36_spill]] %s4280_s0 }
   0x2   :  { %4316 = sst [smem:[#allocation37_spill]] %s4281_s1 }
   0x3   :  { %4317 = sst [smem:[#allocation38_spill]] %s4282_s2 }
   0x4   :  { %4318 = sst [smem:[#allocation39_spill]] %s4283_s3 }
   0x5   :  { %4319 = sst [smem:[#allocation40_spill]] %s4285_s5 }
   0x6   :  { %4320 = sst [smem:[#allocation41_spill]] %s4288_s8 }
   0x7   :  { %13 = vsyncpa [#allocation4], 0 }
   0x8   :  { %15 = vsyncpa [#allocation4 + $0x1], 0 }
   0x9   :  { %16 = vsyncpa [#allocation7], 0 }
   0xa   :  { %18 = vsyncpa [#allocation7 + $0x1], 0 }
   0xb   :  { %19 = vsyncpa [#allocation10], 0 }
   0xc   :  { %20 = vsyncpa [#allocation13], 0 }
   0xd   :  { %21 = vsyncpa [#allocation16], 0 }
   0xe   :  { %22 = vsyncpa [#allocation5], 0 }
   0xf   :  { %24 = vsyncpa [#allocation5 + $0x1], 0  ;;  %s3336_s27 = smov 0   ;;  %s3338_s28 = smov 0  }
  0x10   :  { %s3340_s29 = smov 0   ;;  %s3342_s30 = smov 0  }
  0x11   :  { %s3344_s9 = smov 0   ;;  %s3346_s10 = smov 0  }
  0x12   :  { %s3348_s11 = smov 0   ;;  %s3350_s12 = smov 0  }
  0x13   :  { %s3352_s13 = smov 0   ;;  %s3354_s14 = smov 0  }
  0x14   :  { %s3356_s15 = smov 0   ;;  %s3358_s16 = smov 0  }
  0x15   :  { %s3360_s17 = smov 0   ;;  %s3362_s18 = smov 0  }
  0x16 LB: > { %4321 = sst [smem:[#allocation25_spill]] %s3219_s27  ;;  %s3407_s19 = sadd.s32 4294967295, %s3271_s18   ;;  %s3271_s18 = sphi %s3362_s18, %s30_s18   ;;  %s3267_s17 = sphi %s3360_s17, %s4403_s17   ;;  %s3263_s16 = sphi %s3358_s16, %s4402_s16   ;;  %s3259_s15 = sphi %s3356_s15, %s4401_s15   ;;  %s3255_s14 = sphi %s3354_s14, %s4400_s14   ;;  %s3251_s13 = sphi %s3352_s13, %s4399_s13   ;;  %s3247_s12 = sphi %s3350_s12, %s4398_s12   ;;  %s3243_s11 = sphi %s3348_s11, %s4397_s11   ;;  %s3239_s10 = sphi %s3346_s10, %s4391_s10   ;;  %s3235_s9 = sphi %s3344_s9, %s4396_s9   ;;  %s3231_s30 = sphi %s3342_s30, %s4395_s30   ;;  %s3227_s29 = sphi %s3340_s29, %s4394_s29   ;;  %s3223_s28 = sphi %s3338_s28, %s4389_s28   ;;  %s3219_s27 = sphi %s3336_s27, %s4388_s27  }
  0x17   : > { %4322 = sst [smem:[#allocation26_spill]] %s3223_s28  ;;  %p2221_p0 = scmp.ge.s32.totalorder %s3271_s18, 1 }
  0x18   : > { %4323 = sst [smem:[#allocation27_spill]] %s3227_s29  ;;  %p4292_p1 = scmp.eq.s32.totalorder %s3407_s19, 0 }
  0x19   : > { %4324 = sst [smem:[#allocation28_spill]] %s3239_s10  ;;  %p258_p2 = scmp.lt.s32.totalorder %s3271_s18, 9 }
  0x1a   : > { %4325 = sst [smem:[#allocation29_spill]] %s3255_s14  ;;  %s3273_s21 = smov [#allocation9]  }
  0x1b   : > { %4326 = sst [smem:[#allocation30_spill]] %s3259_s15  ;;  %p3412_p3 = pnand %p2221_p0, %p258_p2 }
  0x1c   : > { %s270_s22 = sshll.u32 %s3273_s21, 4  ;;  %s3274_s24 = smov [#allocation12]   ;;  %s271_s22 = int_to_ptr.vmem [resolvable:$true] %s270_s22 }
  0x1d   : > { %s4327_s20 = scalar_select %p3412_p3, 1, 0 }
  0x1e   : > { %p2707_p4 = pneg %p3412_p3  ;;  %s295_s25 = sshll.u32 %s3274_s24, 4  ;;  %s3424_s25 = int_to_ptr.vmem [resolvable:$true] %s295_s25 }
  0x1f   : > { %4328 = sst [smem:[#allocation31_spill]] %s4327_s20  ;;  %s4330_s3 = sld [smem:[#allocation39_spill]] }
  0x20   : > { %p3420_p5 = pnand %p2707_p4, %p4292_p1 }
  0x22   : > { %s4329_s23 = scalar_select %p3420_p5, 1, 0 }
  0x23   : > { %p3434_p7 = pneg %p3420_p5 }
  0x25   : > { %s2875_s15 = scalar_lea.hbm %s4330_s3, 2048 }
  0x26   : > { %p2876_p6 = scmp.ne.s32.totalorder %s4330_s3, %s2875_s15  ;;  %p2882_p10 = scmp.lt.u32.totalorder %s2875_s15, %s4330_s3 }
  0x28   : > { %p2878_p8 = pnand %p3434_p7, %p2876_p6 }
  0x2a   : > { %p2879_p9 = pneg %p2878_p8 }
  0x2c   : > { %p2884_p11 = pnand %p2882_p10, %p2879_p9 }
  0x2e   : > { %2887 = shalt.err (!%p2884_p11)
}
  0x2f   : > { %s2888_s8 = scalar_lea.vmem %s271_s22, 2048  ;;  %p2896_p2 = scmp.lt.s32.totalorder %s271_s22, %s271_s22 }
  0x30   : > { %p2889_p12 = scmp.ne.s32.totalorder %s271_s22, %s2888_s8  ;;  %p2897_p4 = scmp.lt.s32.totalorder %s2888_s8, %s2888_s8 }
  0x32   : > { %p2891_p13 = pnand %p2889_p12, %p3434_p7  ;;  %p2898_p1 = por %p2897_p4, %p2896_p2 }
  0x34   : > { %p2892_p0 = pneg %p2891_p13 }
  0x36   : > { %p2899_p3 = pnand %p2898_p1, %p2892_p0 }
  0x38   : > { %2902 = shalt.err (!%p2899_p3)
}
  0x39   : > { %s4298_s2 = smov 128   ;;  %s4300_s14 = smov 8  }
  0x3a   : > { %2710 = dma.hbm_to_vmem [thread:$0]  (!%p3420_p5), %s4330_s3, 2048, %s271_s22, [#allocation10], %s4298_s2, %s4298_s2, %s4300_s14  }
  0x3b   : > { %s4332_s5 = sld [smem:[#allocation40_spill]] }
  0x41   : > { %s2903_s27 = scalar_lea.hbm %s4332_s5, 16 }
  0x42   : > { %p2904_p1 = scmp.ne.s32.totalorder %s4332_s5, %s2903_s27  ;;  %p2910_p8 = scmp.lt.u32.totalorder %s2903_s27, %s4332_s5 }
  0x44   : > { %p2906_p3 = pnand %p2904_p1, %p3434_p7 }
  0x46   : > { %p2907_p6 = pneg %p2906_p3 }
  0x48   : > { %p2912_p9 = pnand %p2910_p8, %p2907_p6 }
  0x4a   : > { %2915 = shalt.err (!%p2912_p9)
}
  0x4b   : > { %s2916_s22 = scalar_lea.vmem %s3424_s25, 16  ;;  %s2923_s28 = scalar_lea.vmem %s3424_s25, 32 }
  0x4c   : > { %p2917_p10 = scmp.ne.s32.totalorder %s3424_s25, %s2916_s22  ;;  %p2924_p13 = scmp.lt.s32.totalorder %s3424_s25, %s3424_s25 }
  0x4d   : > { %p2925_p0 = scmp.lt.s32.totalorder %s2923_s28, %s2916_s22 }
  0x4e   : > { %p2919_p11 = pnand %p2917_p10, %p3434_p7 }
  0x4f   : > { %p2926_p2 = por %p2925_p0, %p2924_p13 }
  0x50   : > { %p2920_p12 = pneg %p2919_p11 }
  0x52   : > { %p2927_p4 = pnand %p2926_p2, %p2920_p12 }
  0x54   : > { %2930 = shalt.err (!%p2927_p4)
}
  0x55   : > { %2716 = dma.hbm_to_vmem [thread:$0]  (!%p3420_p5), %s4332_s5, 16, %s3424_s25, [#allocation13]  }
  0x56   : > { %s39_s29 = sadd.s32 1, %s3263_s16  ;;  %s42_s15 = sadd.s32 1, %s3267_s17 }
  0x57   : > { %p40_p1 = scmp.ge.s32.totalorder %s39_s29, 2  ;;  %p4305_p3 = scmp.eq.s32.totalorder %s3271_s18, 0 }
  0x58   : > { %s77_s20 = sadd.s32 1, %s3239_s10  ;;  %p84_p6 = scmp.ne.s32.totalorder %s3239_s10, %s3235_s9 }
  0x59   : > { %s4405_s29 = smov (%p40_p1, %s39_s29), 0  ;;  %s4407_s15 = smov (!%p40_p1, %s42_s15), %s3267_s17 }
  0x5a   : > { %4333 = sst [smem:[#allocation32_spill]] %s4405_s29  ;;  %s47_s26 = ssub.s32 %s3263_s16, %s4405_s29 }
  0x5b   : > { %p3490_p8 = por %p84_p6, %p4305_p3  ;;  %p44_p9 = scmp.ge.s32.totalorder %s4407_s15, 4 }
  0x5c   : > { %p75_p10 = scmp.eq.s32.totalorder %s47_s26, 0  ;;  %p90_p11 = scmp.ne.s32.totalorder %s3235_s9, %s3231_s30 }
  0x5d   : > { %p4304_p12 = scmp.lt.s32.totalorder %s3271_s18, 8  ;;  %s4409_s15 = smov (%p44_p9, %s4407_s15), 0 }
  0x5e   : > { %4335 = sst [smem:[#allocation33_spill]] %s4409_s15  ;;  %s3504_s8 = ssub.s32 %s3267_s17, %s4409_s15 }
  0x5f   : > { %s3500_s24 = scalar_select %p75_p10, %s3239_s10, %s77_s20  }
  0x60   : > { %p4337_p13 = scmp.eq.s32.totalorder %s3407_s19, 0  ;;  %s48_s28 = sor.u32 %s47_s26, %s3504_s8 }
  0x61   : > { %4336 = sst [smem:[#allocation34_spill]] %s3500_s24  ;;  %p3514_p4 = scmp.eq.s32.totalorder %s48_s28, 0 }
  0x62   : > { %p3508_p0 = por %p90_p11, %p4337_p13  ;;  %s354_s0 = sand.u32 1, %s3271_s18  }
  0x63   : > { %s4340_s30 = scalar_select %p3514_p4, 1, 0 }
  0x64   : > { %s4338_s22 = scalar_select %p3508_p0, 1, 0 }
  0x65   : > { %s356_s27 = sand.u32 1, %s3239_s10   ;;  %s2260_s20 = sshll.u32 %s3263_s16, 13 }
  0x66   : > { %4339 = sst [smem:[#allocation35_spill]] %s4338_s22  ;;  %s2233_s2 = sshll.u32 %s356_s27, 9 }
  0x67   : > { %s4341_s1 = sld [smem:[#allocation37_spill]]  ;;  %s358_s15 = scalar_lea.vmem [#allocation6], %s2233_s2 }
  0x68   : > { %s365_s26 = sshll.u32 %s358_s15, 4  ;;  %p3530_p1 = pnand %p4304_p12, %p3490_p8  ;;  %s3534_s26 = int_to_ptr.vmem [resolvable:$true] %s365_s26 }
  0x69   : > { %s3277_s27 = smov [#allocation11]   ;;  %s3538_s14 = scalar_lea.sflag [#allocation7], %s354_s0 }
  0x6a   : > { %s3536_s3 = sshll.u32 %s3277_s27, 4  ;;  %p2933_p9 = pneg %p3530_p1  ;;  %s285_s3 = int_to_ptr.vmem [resolvable:$true] %s3536_s3 }
  0x6d   : > { %s3524_s5 = scalar_lea.hbm %s4341_s1, %s2260_s20  ;;  %s2936_s25 = scalar_lea.hbm %s4341_s1, 16384 }
  0x6e   : > { %s2931_s20 = scalar_lea.hbm %s3524_s5, 8192  ;;  %p2937_p11 = scmp.lt.u32.totalorder %s3524_s5, %s4341_s1 }
  0x6f   : > { %p2932_p6 = scmp.ne.s32.totalorder %s3524_s5, %s2931_s20  ;;  %p2938_p13 = scmp.lt.u32.totalorder %s2936_s25, %s2931_s20 }
  0x70   : > { %p2940_p12 = scmp.lt.u32.totalorder %s2931_s20, %s3524_s5 }
  0x71   : > { %p2934_p10 = pnand %p2933_p9, %p2932_p6  ;;  %p2939_p2 = por %p2938_p13, %p2937_p11 }
  0x73   : > { %p2935_p8 = pneg %p2934_p10  ;;  %p2941_p3 = por %p2940_p12, %p2939_p2 }
  0x75   : > { %p2942_p0 = pnand %p2941_p3, %p2935_p8 }
  0x77   : > { %2945 = shalt.err (!%p2942_p0)
}
  0x78   : > { %s2946_s0 = scalar_lea.vmem %s3534_s26, 8192  ;;  %s3278_s27 = smov [#allocation6]  }
  0x79   : > { %p2947_p6 = scmp.ne.s32.totalorder %s3534_s26, %s2946_s0  ;;  %s2951_s2 = sshll.u32 %s3278_s27, 4  ;;  %s2952_s2 = int_to_ptr.vmem [resolvable:$false] %s2951_s2 }
  0x7a   : > { %s2953_s29 = scalar_lea.vmem %s2952_s2, 16384  ;;  %p2954_p5 = scmp.lt.s32.totalorder %s3534_s26, %s2952_s2 }
  0x7b   : > { %p2949_p10 = pnand %p2947_p6, %p2933_p9  ;;  %p2955_p11 = scmp.lt.s32.totalorder %s2953_s29, %s2946_s0 }
  0x7d   : > { %p2950_p4 = pneg %p2949_p10  ;;  %p2956_p13 = por %p2955_p11, %p2954_p5 }
  0x7f   : > { %p2957_p12 = pnand %p2956_p13, %p2950_p4 }
  0x81   : > { %2960 = shalt.err (!%p2957_p12)
}
  0x82   : > { %s4343_s24 = smov 8   ;;  %s4344_s20 = smov 128  }
  0x83   : > { %2729 = dma.hbm_to_vmem [thread:$0]  (!%p3530_p1), %s3524_s5, 8192, %s3534_s26, %s3538_s14, %s4344_s20, %s4344_s20, %s4343_s24  }
  0x84   : > { %s2961_s27 = scalar_lea.hbm %s4284_s4, 16 }
  0x85   : > { %p2962_p5 = scmp.ne.s32.totalorder %s4284_s4, %s2961_s27  ;;  %p2968_p2 = scmp.lt.u32.totalorder %s2961_s27, %s4284_s4 }
  0x87   : > { %p2964_p3 = pnand %p2962_p5, %p3434_p7 }
  0x89   : > { %p2965_p0 = pneg %p2964_p3 }
  0x8b   : > { %p2970_p4 = pnand %p2968_p2, %p2965_p0 }
  0x8d   : > { %2973 = shalt.err (!%p2970_p4)
}
  0x8e   : > { %s2974_s1 = scalar_lea.vmem %s285_s3, 16  ;;  %s2981_s5 = scalar_lea.vmem %s285_s3, 32 }
  0x8f   : > { %p2975_p1 = scmp.ne.s32.totalorder %s285_s3, %s2974_s1  ;;  %p2982_p6 = scmp.lt.s32.totalorder %s285_s3, %s285_s3 }
  0x90   : > { %p2983_p10 = scmp.lt.s32.totalorder %s2981_s5, %s2974_s1 }
  0x91   : > { %p2977_p9 = pnand %p2975_p1, %p3434_p7 }
  0x92   : > { %p2984_p11 = por %p2983_p10, %p2982_p6 }
  0x93   : > { %p2978_p8 = pneg %p2977_p9 }
  0x95   : > { %p2985_p13 = pnand %p2984_p11, %p2978_p8 }
  0x97   : > { %2988 = shalt.err (!%p2985_p13)
}
  0x98   : > { %p4345_p12 = scmp.ne.s32.totalorder %s4329_s23, 0  ;;  %s3279_s25 = smov [#allocation14]  }
  0x99   : > { %s305_s27 = sshll.u32 %s3279_s25, 4  ;;  %s3280_s0 = smov [#allocation15]   ;;  %s306_s27 = int_to_ptr.vmem [resolvable:$true] %s305_s27 }
  0x9a   : > { %2713 = dma.hbm_to_vmem [thread:$0]  (!%p4345_p12), %s4284_s4, 16, %s285_s3, [#allocation10]  }
  0x9b   : > { %s319_s2 = sshll.u32 %s3280_s0, 4  ;;  %s2989_s10 = scalar_lea.hbm %s4286_s6, 2048  ;;  %s320_s2 = int_to_ptr.vmem [resolvable:$true] %s319_s2 }
  0x9c   : > { %p2990_p5 = scmp.ne.s32.totalorder %s4286_s6, %s2989_s10  ;;  %p2996_p2 = scmp.lt.u32.totalorder %s2989_s10, %s4286_s6 }
  0x9e   : > { %p2992_p3 = pnand %p2990_p5, %p3434_p7 }
  0xa0   : > { %p2993_p0 = pneg %p2992_p3 }
  0xa2   : > { %p2998_p4 = pnand %p2996_p2, %p2993_p0 }
  0xa4   : > { %3001 = shalt.err (!%p2998_p4)
}
  0xa5   : > { %s3002_s3 = scalar_lea.vmem %s306_s27, 2048  ;;  %p3010_p6 = scmp.lt.s32.totalorder %s306_s27, %s306_s27 }
  0xa6   : > { %p3003_p1 = scmp.ne.s32.totalorder %s306_s27, %s3002_s3  ;;  %p3011_p10 = scmp.lt.s32.totalorder %s3002_s3, %s3002_s3 }
  0xa8   : > { %p3005_p9 = pnand %p3003_p1, %p3434_p7  ;;  %p3012_p11 = por %p3011_p10, %p3010_p6 }
  0xaa   : > { %p3006_p8 = pneg %p3005_p9 }
  0xac   : > { %p3013_p13 = pnand %p3012_p11, %p3006_p8 }
  0xae   : > { %3016 = shalt.err (!%p3013_p13)
}
  0xaf   : > { %2719 = dma.hbm_to_vmem [thread:$0]  (!%p4345_p12), %s4286_s6, 2048, %s306_s27, [#allocation13], %s4344_s20, %s4344_s20, %s4343_s24  }
  0xb0   : > { %s3017_s0 = scalar_lea.hbm %s4287_s7, 16 }
  0xb1   : > { %p3018_p5 = scmp.ne.s32.totalorder %s4287_s7, %s3017_s0  ;;  %p3024_p2 = scmp.lt.u32.totalorder %s3017_s0, %s4287_s7 }
  0xb3   : > { %p3020_p3 = pnand %p3018_p5, %p3434_p7 }
  0xb5   : > { %p3021_p0 = pneg %p3020_p3 }
  0xb7   : > { %p3026_p4 = pnand %p3024_p2, %p3021_p0 }
  0xb9   : > { %3029 = shalt.err (!%p3026_p4)
}
  0xba   : > { %s3030_s26 = scalar_lea.vmem %s320_s2, 16  ;;  %s3037_s27 = scalar_lea.vmem %s320_s2, 32 }
  0xbb   : > { %p3031_p1 = scmp.ne.s32.totalorder %s320_s2, %s3030_s26  ;;  %p3038_p6 = scmp.lt.s32.totalorder %s320_s2, %s320_s2 }
  0xbc   : > { %p3039_p10 = scmp.lt.s32.totalorder %s3037_s27, %s3030_s26 }
  0xbd   : > { %p3033_p9 = pnand %p3031_p1, %p3434_p7 }
  0xbe   : > { %p3040_p11 = por %p3039_p10, %p3038_p6 }
  0xbf   : > { %p3034_p8 = pneg %p3033_p9 }
  0xc1   : > { %p3041_p13 = pnand %p3040_p11, %p3034_p8 }
  0xc3   : > { %3044 = shalt.err (!%p3041_p13)
}
  0xc4   : > { %2722 = dma.hbm_to_vmem [thread:$0]  (!%p4345_p12), %s4287_s7, 16, %s320_s2, [#allocation16]  }
  0xc5   : > { %s51_s21 = sadd.s32 1, %s3251_s13  ;;  %p4346_p7 = scmp.ne.s32.totalorder %s4340_s30, 0 }
  0xc6   : > { %p58_p5 = scmp.ne.s32.totalorder %s3251_s13, %s3247_s12  ;;  %p64_p3 = scmp.ne.s32.totalorder %s3247_s12, %s3243_s11 }
  0xc7   : > { %s3631_s23 = scalar_select %p4346_p7, %s3251_s13, %s51_s21  }
  0xc8   : > { %s330_s10 = sand.u32 1, %s3251_s13   ;;  %s2230_s15 = sshll.u32 %s3263_s16, 2 }
  0xc9   : > { %p4347_p0 = scmp.eq.s32.totalorder %s3271_s18, 0  ;;  %p4348_p4 = scmp.eq.s32.totalorder %s3407_s19, 0 }
  0xca   : > { %s2228_s0 = sshll.u32 %s330_s10, 10  ;;  %s2259_s28 = sshll.u32 %s3267_s17, 8 }
  0xcb   : > { %p60_p2 = por %p4347_p0, %p58_p5  ;;  %p3643_p1 = por %p4348_p4, %p64_p3 }
  0xcc   : > { %s341_s29 = sadd.s32 %s2259_s28, %s2230_s15  ;;  %s334_s2 = scalar_lea.vmem [#allocation3], %s2228_s0 }
  0xcd   : > { %s344_s1 = sshll.u32 %s334_s2, 4  ;;  %s2232_s30 = sshll.u32 %s341_s29, 7  ;;  %s3648_s1 = int_to_ptr.vmem [resolvable:$true] %s344_s1 }
  0xce   : > { %s4350_s11 = sld [smem:[#allocation36_spill]]  ;;  %p4352_p12 = scmp.lt.s32.totalorder %s3271_s18, 8 }
  0xcf   : > { %s3661_s21 = scalar_lea.sflag [#allocation4], %s330_s10 }
  0xd0   : > { %p3657_p9 = pnand %p4352_p12, %p60_p2 }
  0xd2   : > { %p3047_p6 = pneg %p3657_p9 }
  0xd4   : > { %s4351_s3 = smov %s4350_s11  ;;  %s3653_s27 = scalar_lea.hbm %s4350_s11, %s2232_s30 }
  0xd5   : > { %s3045_s15 = scalar_lea.hbm %s3653_s27, 16384  ;;  %s3050_s29 = scalar_lea.hbm %s4351_s3, 131072 }
  0xd6   : > { %p3046_p8 = scmp.ne.s32.totalorder %s3653_s27, %s3045_s15  ;;  %p3051_p13 = scmp.lt.u32.totalorder %s3653_s27, %s4351_s3 }
  0xd7   : > { %p3052_p7 = scmp.lt.u32.totalorder %s3050_s29, %s3045_s15  ;;  %p3054_p3 = scmp.lt.u32.totalorder %s3045_s15, %s3653_s27 }
  0xd8   : > { %p3048_p10 = pnand %p3047_p6, %p3046_p8 }
  0xd9   : > { %p3053_p5 = por %p3052_p7, %p3051_p13 }
  0xda   : > { %p3049_p11 = pneg %p3048_p10 }
  0xdb   : > { %p3055_p0 = por %p3054_p3, %p3053_p5 }
  0xdd   : > { %p3056_p2 = pnand %p3055_p0, %p3049_p11 }
  0xdf   : > { %3059 = shalt.err (!%p3056_p2)
}
  0xe0   : > { %s3060_s10 = scalar_lea.vmem %s3648_s1, 16384  ;;  %s3281_s5 = smov [#allocation3]  }
  0xe1   : > { %p3061_p4 = scmp.ne.s32.totalorder %s3648_s1, %s3060_s10  ;;  %s3065_s26 = sshll.u32 %s3281_s5, 4  ;;  %s3066_s26 = int_to_ptr.vmem [resolvable:$false] %s3065_s26 }
  0xe2   : > { %s3067_s11 = scalar_lea.vmem %s3066_s26, 32768  ;;  %p3068_p10 = scmp.lt.s32.totalorder %s3648_s1, %s3066_s26 }
  0xe3   : > { %p3063_p12 = pnand %p3061_p4, %p3047_p6  ;;  %p3069_p13 = scmp.lt.s32.totalorder %s3067_s11, %s3060_s10 }
  0xe5   : > { %p3064_p8 = pneg %p3063_p12  ;;  %p3070_p7 = por %p3069_p13, %p3068_p10 }
  0xe7   : > { %p3071_p5 = pnand %p3070_p7, %p3064_p8 }
  0xe9   : > { %3074 = shalt.err (!%p3071_p5)
}
  0xea   : > { %s3282_s15 = smov 1024   ;;  %s4354_s0 = sld [smem:[#allocation27_spill]] }
  0xeb   : > { %s4355_s28 = sld [smem:[#allocation26_spill]]  ;;  %s4356_s29 = sld [smem:[#allocation25_spill]] }
  0xec   : > { %s3283_s2 = smov 512   ;;  %s3284_s30 = smov 32  }
  0xed   : > { %2726 = dma.hbm_to_vmem [thread:$0]  (!%p3657_p9), %s3653_s27, 16384, %s3648_s1, %s3661_s21, %s3282_s15, %s3283_s2, %s3284_s30  }
  0xee   : > { %s2220_s10 = sadd.s32 4294967294, %s3271_s18   ;;  %p4357_p6 = scmp.eq.s32.totalorder %s3504_s8, 0 }
  0xef   : > { %p245_p0 = scmp.eq.s32.totalorder %s3407_s19, 7  ;;  %p251_p2 = scmp.eq.s32.totalorder %s2220_s10, 7 }
  0xf0   : > { %s103_s5 = sadd.s32 1, %s4354_s0  ;;  %p4358_p4 = scmp.eq.s32.totalorder %s3271_s18, 0 }
  0xf1   : > { %s3694_s26 = scalar_select %p4357_p6, %s4354_s0, %s103_s5  }
  0xf2   : > { %p110_p11 = scmp.ne.s32.totalorder %s4354_s0, %s4355_s28  ;;  %p116_p3 = scmp.ne.s32.totalorder %s4355_s28, %s4356_s29 }
  0xf3   : > { %p4359_p8 = scmp.eq.s32.totalorder %s3407_s19, 0  ;;  %s377_s8 = sand.u32 1, %s4354_s0  }
  0xf4   : > { %p112_p12 = por %p110_p11, %p4358_p4  ;;  %p3709_p13 = por %p245_p0, %p110_p11 }
  0xf5   : > { %p3705_p10 = por %p116_p3, %p4359_p8  ;;  %p3713_p9 = por %p251_p2, %p116_p3 }
  0xf6   : > { %s4361_s22 = scalar_select %p3709_p13, 1, 0 }
  0xf7   : > { %s4360_s11 = scalar_select %p3705_p10, 1, 0 }
  0xf8   : > { %s4362_s1 = scalar_select %p3713_p9, 1, 0 }
  0xf9   : > { %s2261_s27 = sshll.u32 %s3267_s17, 12  ;;  %s2236_s21 = sshll.u32 %s377_s8, 8 }
  0xfa   : > { %s4363_s29 = sld [smem:[#allocation38_spill]]  ;;  %p4365_p7 = scmp.lt.s32.totalorder %s3271_s18, 8 }
  0xfb   : > { %s379_s5 = scalar_lea.vmem [#allocation8], %s2236_s21 }
  0xfc   : > { %p3726_p5 = pnand %p4365_p7, %p112_p12  ;;  %s386_s0 = sshll.u32 %s379_s5, 4  ;;  %s3730_s0 = int_to_ptr.vmem [resolvable:$true] %s386_s0 }
  0xfe   : > { %p3077_p11 = pneg %p3726_p5 }
 0x100   : > { %s4364_s2 = smov %s4363_s29  ;;  %s3722_s30 = scalar_lea.hbm %s4363_s29, %s2261_s27 }
 0x101   : > { %s3075_s8 = scalar_lea.hbm %s3722_s30, 4096  ;;  %s3080_s28 = scalar_lea.hbm %s4364_s2, 16384 }
 0x102   : > { %p3076_p6 = scmp.ne.s32.totalorder %s3722_s30, %s3075_s8  ;;  %p3081_p2 = scmp.lt.u32.totalorder %s3722_s30, %s4364_s2 }
 0x103   : > { %p3082_p4 = scmp.lt.u32.totalorder %s3080_s28, %s3075_s8  ;;  %p3084_p8 = scmp.lt.u32.totalorder %s3075_s8, %s3722_s30 }
 0x104   : > { %p3078_p3 = pnand %p3077_p11, %p3076_p6 }
 0x105   : > { %p3083_p12 = por %p3082_p4, %p3081_p2 }
 0x106   : > { %p3079_p0 = pneg %p3078_p3 }
 0x107   : > { %p3085_p7 = por %p3084_p8, %p3083_p12 }
 0x109   : > { %p3086_p9 = pnand %p3085_p7, %p3079_p0 }
 0x10b   : > { %3089 = shalt.err (!%p3086_p9)
}
 0x10c   : > { %s3090_s21 = scalar_lea.vmem %s3730_s0, 4096  ;;  %s3285_s5 = smov [#allocation8]  }
 0x10d   : > { %p3091_p6 = scmp.ne.s32.totalorder %s3730_s0, %s3090_s21  ;;  %s3095_s27 = sshll.u32 %s3285_s5, 4  ;;  %s3096_s27 = int_to_ptr.vmem [resolvable:$false] %s3095_s27 }
 0x10e   : > { %s3097_s3 = scalar_lea.vmem %s3096_s27, 8192  ;;  %p3098_p10 = scmp.lt.s32.totalorder %s3730_s0, %s3096_s27 }
 0x10f   : > { %p3093_p3 = pnand %p3091_p6, %p3077_p11  ;;  %p3099_p2 = scmp.lt.s32.totalorder %s3097_s3, %s3090_s21 }
 0x111   : > { %p3094_p13 = pneg %p3093_p3  ;;  %p3100_p4 = por %p3099_p2, %p3098_p10 }
 0x113   : > { %p3101_p12 = pnand %p3100_p4, %p3094_p13 }
 0x115   : > { %3104 = shalt.err (!%p3101_p12)
}
 0x116   : > { %2732 = dma.hbm_to_vmem [thread:$0]  (!%p3726_p5), %s3722_s30, 4096, %s3730_s0, %s3538_s14, %s4344_s20, %s4344_s20, %s4343_s24  }
 0x117   : > { %s4367_s8 = sld [smem:[#allocation31_spill]] }
 0x11d   : > { %p4368_p9 = scmp.ne.s32.totalorder %s4367_s8, 0 }
 0x11e   : > { %s400_s15 = sand.u32 (!%p4368_p9), 1, %s3247_s12  }
 0x11f   : > { %398 = sbr.rel (%p4368_p9) target bundleno = 1280 (0x500), region = 52  ;;  %s2240_s28 = sshll.u32 (!%p4368_p9), %s400_s15, 10 }
 0x120   : > { %s401_s29 = scalar_lea.sflag (!%p4368_p9), [#allocation4], %s400_s15  ;;  %s3764_s21 = scalar_lea.vmem (!%p4368_p9), [#allocation3], %s2240_s28 }
 0x126   : > { %3190 = dma.done.wait (%p3643_p1), %s401_s29, 16384  }
 0x127   : > { %3192 = vsyncadd (%p3643_p1), %s401_s29, 4294950912  ;;  %s4369_s10 = sld [smem:[#allocation35_spill]]  ;;  %s409_s5 = sand.u32 1, %s3407_s19  }
 0x128   : > { %s411_s14 = sand.u32 1, %s3235_s9   ;;  %s410_s20 = scalar_lea.sflag [#allocation7], %s409_s5 }
 0x129   : > { %s2241_s24 = sshll.u32 %s411_s14, 9 }
 0x12a   : > { %s3772_s30 = scalar_lea.vmem [#allocation6], %s2241_s24 }
 0x12d   : > { %p4370_p10 = scmp.ne.s32.totalorder %s4369_s10, 0 }
 0x12f   : > { %3194 = dma.done.wait (%p4370_p10), %s410_s20, 8192  }
 0x130   : > { %3196 = vsyncadd (%p4370_p10), %s410_s20, 4294959104  ;;  %s4371_s0 = sld [smem:[#allocation26_spill]]  ;;  %p4372_p1 = scmp.ne.s32.totalorder %s4360_s11, 0 }
 0x136   : > { %s420_s27 = sand.u32 1, %s4371_s0  }
 0x137   : > { %s2242_s25 = sshll.u32 %s420_s27, 8 }
 0x138   : > { %s3781_s3 = scalar_lea.vmem [#allocation8], %s2242_s25 }
 0x139   : > { %3198 = dma.done.wait (%p4372_p1), %s410_s20, 4096  }
 0x13a   : > { %3200 = vsyncadd (%p4372_p1), %s410_s20, 4294963200  ;;  %p4373_p13 = scmp.eq.s32.totalorder %s3407_s19, 0 }
 0x13c   : > { %3202 = dma.done.wait (%p4373_p13), [#allocation10], 2064   ;;  %p4374_p5 = pmov %p4373_p13 }
 0x13e   : > { %3204 = vsyncadd (%p4374_p5), [#allocation10], 4294965232  ;;  %p4375_p11 = pmov %p4374_p5 }
 0x13f   : > { %p4376_p0 = pmov %p4374_p5 }
 0x140   : > { %3206 = dma.done.wait (%p4375_p11), [#allocation13], 2064  }
 0x141   : > { %3208 = vsyncadd (%p4376_p0), [#allocation13], 4294965232  ;;  %p4377_p8 = pmov %p4376_p0 }
 0x142   : > { %p4378_p7 = pmov %p4376_p0 }
 0x143   : > { %3210 = dma.done.wait (%p4377_p8), [#allocation16], 16  }
 0x144   : > { %3212 = vsyncadd (%p4378_p7), [#allocation16], 4294967280  ;;  %s3799_s11 = scalar_lea.vmem [#allocation17], %s2242_s25  ;;  %s4379_s8 = sld [smem:[#allocation29_spill]] }
 0x14a   : > { %p2249_p6 = scmp.ne.s32.totalorder %s4379_s8, 0 }
 0x14b   : > { %v3286_v0 = vmov (!%p2249_p6), 0.0  }
 0x14c   : > { %493 = sbr.rel (%p2249_p6) target bundleno = 348 (0x15c), region = 88  ;;  %494 = vst [vmem:[#allocation2] sm:$0xff] (!%p2249_p6), %v3286_v0  ;;  %495 = vst [vmem:[#allocation2 + $0x8] sm:$0xff] (!%p2249_p6), %v3286_v0 }
 0x14d   : > { %496 = vst [vmem:[#allocation2 + $0x10] sm:$0xff] (!%p2249_p6), %v3286_v0  ;;  %497 = vst [vmem:[#allocation2 + $0x18] sm:$0xff] (!%p2249_p6), %v3286_v0 }
 0x14e   : > { %498 = vst [vmem:[#allocation2 + $0x20] sm:$0xff] (!%p2249_p6), %v3286_v0  ;;  %499 = vst [vmem:[#allocation2 + $0x28] sm:$0xff] (!%p2249_p6), %v3286_v0 }
 0x14f   : > { %500 = vst [vmem:[#allocation2 + $0x30] sm:$0xff] (!%p2249_p6), %v3286_v0  ;;  %501 = vst [vmem:[#allocation2 + $0x38] sm:$0xff] (!%p2249_p6), %v3286_v0 }
 0x150   : > { %502 = vst [vmem:[#allocation2 + $0x40] sm:$0xff] (!%p2249_p6), %v3286_v0  ;;  %503 = vst [vmem:[#allocation2 + $0x48] sm:$0xff] (!%p2249_p6), %v3286_v0 }
 0x151   : > { %504 = vst [vmem:[#allocation2 + $0x50] sm:$0xff] (!%p2249_p6), %v3286_v0  ;;  %505 = vst [vmem:[#allocation2 + $0x58] sm:$0xff] (!%p2249_p6), %v3286_v0 }
 0x152   : > { %506 = vst [vmem:[#allocation2 + $0x60] sm:$0xff] (!%p2249_p6), %v3286_v0  ;;  %507 = vst [vmem:[#allocation2 + $0x68] sm:$0xff] (!%p2249_p6), %v3286_v0 }
 0x153   : > { %508 = vst [vmem:[#allocation2 + $0x70] sm:$0xff] %v3286_v0  ;;  %509 = vst [vmem:[#allocation2 + $0x78] sm:$0xff] %v3286_v0 }
 0x154   : > { %510 = vst [vmem:[#allocation2 + $0x80] sm:$0xff] %v3286_v0  ;;  %511 = vst [vmem:[#allocation2 + $0x88] sm:$0xff] %v3286_v0 }
 0x155   : > { %512 = vst [vmem:[#allocation2 + $0x90] sm:$0xff] %v3286_v0  ;;  %513 = vst [vmem:[#allocation2 + $0x98] sm:$0xff] %v3286_v0 }
 0x156   : > { %514 = vst [vmem:[#allocation2 + $0xa0] sm:$0xff] %v3286_v0  ;;  %515 = vst [vmem:[#allocation2 + $0xa8] sm:$0xff] %v3286_v0 }
 0x157   : > { %516 = vst [vmem:[#allocation2 + $0xb0] sm:$0xff] %v3286_v0  ;;  %517 = vst [vmem:[#allocation2 + $0xb8] sm:$0xff] %v3286_v0 }
 0x158   : > { %518 = vst [vmem:[#allocation2 + $0xc0] sm:$0xff] %v3286_v0  ;;  %519 = vst [vmem:[#allocation2 + $0xc8] sm:$0xff] %v3286_v0 }
 0x159   : > { %520 = vst [vmem:[#allocation2 + $0xd0] sm:$0xff] %v3286_v0  ;;  %521 = vst [vmem:[#allocation2 + $0xd8] sm:$0xff] %v3286_v0 }
 0x15a   : > { %522 = vst [vmem:[#allocation2 + $0xe0] sm:$0xff] %v3286_v0  ;;  %523 = vst [vmem:[#allocation2 + $0xe8] sm:$0xff] %v3286_v0 }
 0x15b   : > { %524 = vst [vmem:[#allocation2 + $0xf0] sm:$0xff] %v3286_v0  ;;  %525 = vst [vmem:[#allocation2 + $0xf8] sm:$0xff] %v3286_v0 }
 0x15c PF: > { %v686_v1 = vld [vmem:[%s3772_s30] sm:$0xff]  ;;  %v687_v2 = vld [vmem:[%s3772_s30 + $0x8] sm:$0xff]  ;;  %v3287_v4 = vmov 0.0|0.0   ;;  %v688_v7 = vld [vmem:[%s3772_s30 + $0x10] sm:$0xff]  ;;  %s4380_s19 = sld [smem:[#allocation29_spill]] }
 0x15d   : > { %v718_v3 = vld [vmem:[%s3772_s30 + $0x100] sm:$0xff]  ;;  %2519 = vmatprep.subr.bf16.mxu0 %v3287_v4  ;;  %2567 = vmatprep.subr.bf16.mxu1 %v3287_v4  ;;  %v2520_v5 = vpack.c.bf16 %v687_v2, %v686_v1  ;;  %v719_v6 = vld [vmem:[%s3772_s30 + $0x108] sm:$0xff]  ;;  %v689_v8 = vld [vmem:[%s3772_s30 + $0x18] sm:$0xff] }
 0x15e   : > { %v2568_v9 = vpack.c.bf16 %v719_v6, %v718_v3  ;;  %v720_v10 = vld [vmem:[%s3772_s30 + $0x110] sm:$0xff]  ;;  %v721_v11 = vld [vmem:[%s3772_s30 + $0x118] sm:$0xff]  ;;  %v2523_v12 = vpack.c.bf16 %v689_v8, %v688_v7  ;;  %v690_v14 = vld [vmem:[%s3772_s30 + $0x20] sm:$0xff] }
 0x15f   : > { %2521 = vmatpush1.bf16.msra.mxu0 %v2520_v5  ;;  %v2571_v13 = vpack.c.bf16 %v721_v11, %v720_v10  ;;  %v691_v15 = vld [vmem:[%s3772_s30 + $0x28] sm:$0xff]  ;;  %v722_v16 = vld [vmem:[%s3772_s30 + $0x120] sm:$0xff]  ;;  %v692_v20 = vld [vmem:[%s3772_s30 + $0x30] sm:$0xff] }
 0x160   : > { %2569 = vmatpush1.bf16.msra.mxu1 %v2568_v9  ;;  %2522 = vmatprep.subr.bf16.mxu0 %v3287_v4  ;;  %v723_v17 = vld [vmem:[%s3772_s30 + $0x128] sm:$0xff]  ;;  %v2526_v18 = vpack.c.bf16 %v691_v15, %v690_v14  ;;  %v693_v21 = vld [vmem:[%s3772_s30 + $0x38] sm:$0xff]  ;;  %v724_v22 = vld [vmem:[%s3772_s30 + $0x130] sm:$0xff] }
 0x161   : > { %2570 = vmatprep.subr.bf16.mxu1 %v3287_v4  ;;  %v2574_v19 = vpack.c.bf16 %v723_v17, %v722_v16  ;;  %v725_v23 = vld [vmem:[%s3772_s30 + $0x138] sm:$0xff]  ;;  %v2529_v24 = vpack.c.bf16 %v693_v21, %v692_v20  ;;  %v694_v26 = vld [vmem:[%s3772_s30 + $0x40] sm:$0xff]  ;;  %v695_v27 = vld [vmem:[%s3772_s30 + $0x48] sm:$0xff] }
 0x162   : > { %v2577_v25 = vpack.c.bf16 %v725_v23, %v724_v22  ;;  %v726_v28 = vld [vmem:[%s3772_s30 + $0x140] sm:$0xff]  ;;  %v727_v29 = vld [vmem:[%s3772_s30 + $0x148] sm:$0xff]  ;;  %v2532_v30 = vpack.c.bf16 %v695_v27, %v694_v26  ;;  %v696_v32 = vld [vmem:[%s3772_s30 + $0x50] sm:$0xff]  ;;  %p2250_p3 = scmp.ne.s32.totalorder %s4380_s19, 1 }
 0x163   : > { %2524 = vmatpush1.bf16.msra.mxu0 %v2523_v12  ;;  %v2580_v31 = vpack.c.bf16 %v727_v29, %v726_v28  ;;  %v697_v33 = vld [vmem:[%s3772_s30 + $0x58] sm:$0xff]  ;;  %v728_v34 = vld [vmem:[%s3772_s30 + $0x150] sm:$0xff]  ;;  %v698_v38 = vld [vmem:[%s3772_s30 + $0x60] sm:$0xff] }
 0x164   : > { %2572 = vmatpush1.bf16.msra.mxu1 %v2571_v13  ;;  %2525 = vmatprep.subr.bf16.mxu0 %v3287_v4  ;;  %v729_v35 = vld [vmem:[%s3772_s30 + $0x158] sm:$0xff]  ;;  %v2535_v36 = vpack.c.bf16 %v697_v33, %v696_v32  ;;  %v699_v39 = vld [vmem:[%s3772_s30 + $0x68] sm:$0xff]  ;;  %v730_v40 = vld [vmem:[%s3772_s30 + $0x160] sm:$0xff] }
 0x165   : > { %2573 = vmatprep.subr.bf16.mxu1 %v3287_v4  ;;  %v2583_v37 = vpack.c.bf16 %v729_v35, %v728_v34  ;;  %v731_v41 = vld [vmem:[%s3772_s30 + $0x168] sm:$0xff]  ;;  %v561_v43 = vld [vmem:[%s3764_s21 + $0x18] sm:$0xff]  ;;  %v2538_v44 = vpack.c.bf16 %v699_v39, %v698_v38  ;;  %v700_v46 = vld [vmem:[%s3772_s30 + $0x70] sm:$0xff] }
 0x166   : > { %v559_v42 = vld [vmem:[%s3764_s21 + $0x8] sm:$0xff]  ;;  %1039 = vmatprep.mubr.f32.mxu1 %v561_v43  ;;  %v2586_v45 = vpack.c.bf16 %v731_v41, %v730_v40  ;;  %v701_v47 = vld [vmem:[%s3772_s30 + $0x78] sm:$0xff]  ;;  %v732_v48 = vld [vmem:[%s3772_s30 + $0x170] sm:$0xff] }
 0x167   : > { %2527 = vmatpush1.bf16.msra.mxu0 %v2526_v18  ;;  %814 = vmatprep.mubr.f32.mxu0 %v559_v42  ;;  %v733_v49 = vld [vmem:[%s3772_s30 + $0x178] sm:$0xff]  ;;  %v2541_v50 = vpack.c.bf16 %v701_v47, %v700_v46  ;;  %v702_v52 = vld [vmem:[%s3772_s30 + $0x80] sm:$0xff]  ;;  %v703_v53 = vld [vmem:[%s3772_s30 + $0x88] sm:$0xff] }
 0x168   : > { %2575 = vmatpush1.bf16.msra.mxu1 %v2574_v19  ;;  %2528 = vmatprep.subr.bf16.mxu0 %v3287_v4  ;;  %v2589_v51 = vpack.c.bf16 %v733_v49, %v732_v48  ;;  %v734_v54 = vld [vmem:[%s3772_s30 + $0x180] sm:$0xff]  ;;  %v735_v55 = vld [vmem:[%s3772_s30 + $0x188] sm:$0xff]  ;;  %v2544_v56 = vpack.c.bf16 %v703_v53, %v702_v52  ;;  %v704_v58 = vld [vmem:[%s3772_s30 + $0x90] sm:$0xff] }
 0x169   : > { %2576 = vmatprep.subr.bf16.mxu1 %v3287_v4  ;;  %v2592_v57 = vpack.c.bf16 %v735_v55, %v734_v54  ;;  %v705_v59 = vld [vmem:[%s3772_s30 + $0x98] sm:$0xff]  ;;  %v736_v60 = vld [vmem:[%s3772_s30 + $0x190] sm:$0xff]  ;;  %v706_v0 = vld [vmem:[%s3772_s30 + $0xa0] sm:$0xff] }
 0x16a   : > { %v737_v61 = vld [vmem:[%s3772_s30 + $0x198] sm:$0xff]  ;;  %v2547_v62 = vpack.c.bf16 %v705_v59, %v704_v58  ;;  %v707_v1 = vld [vmem:[%s3772_s30 + $0xa8] sm:$0xff]  ;;  %v738_v2 = vld [vmem:[%s3772_s30 + $0x1a0] sm:$0xff] }
 0x16b   : > { %2530 = vmatpush1.bf16.msra.mxu0 %v2529_v24  ;;  %v2595_v63 = vpack.c.bf16 %v737_v61, %v736_v60  ;;  %v739_v3 = vld [vmem:[%s3772_s30 + $0x1a8] sm:$0xff]  ;;  %v2550_v5 = vpack.c.bf16 %v707_v1, %v706_v0  ;;  %v708_v7 = vld [vmem:[%s3772_s30 + $0xb0] sm:$0xff]  ;;  %v709_v8 = vld [vmem:[%s3772_s30 + $0xb8] sm:$0xff] }
 0x16c   : > { %2578 = vmatpush1.bf16.msra.mxu1 %v2577_v25  ;;  %2531 = vmatprep.subr.bf16.mxu0 %v3287_v4  ;;  %v2598_v6 = vpack.c.bf16 %v739_v3, %v738_v2  ;;  %v740_v9 = vld [vmem:[%s3772_s30 + $0x1b0] sm:$0xff]  ;;  %v741_v10 = vld [vmem:[%s3772_s30 + $0x1b8] sm:$0xff]  ;;  %v2553_v11 = vpack.c.bf16 %v709_v8, %v708_v7  ;;  %v710_v13 = vld [vmem:[%s3772_s30 + $0xc0] sm:$0xff] }
 0x16d   : > { %2579 = vmatprep.subr.bf16.mxu1 %v3287_v4  ;;  %v2601_v12 = vpack.c.bf16 %v741_v10, %v740_v9  ;;  %v711_v14 = vld [vmem:[%s3772_s30 + $0xc8] sm:$0xff]  ;;  %v742_v15 = vld [vmem:[%s3772_s30 + $0x1c0] sm:$0xff]  ;;  %v712_v19 = vld [vmem:[%s3772_s30 + $0xd0] sm:$0xff] }
 0x16e   : > { %v743_v16 = vld [vmem:[%s3772_s30 + $0x1c8] sm:$0xff]  ;;  %v2556_v17 = vpack.c.bf16 %v711_v14, %v710_v13  ;;  %v713_v20 = vld [vmem:[%s3772_s30 + $0xd8] sm:$0xff]  ;;  %v744_v21 = vld [vmem:[%s3772_s30 + $0x1d0] sm:$0xff] }
 0x16f   : > { %2533 = vmatpush1.bf16.msra.mxu0 %v2532_v30  ;;  %v2604_v18 = vpack.c.bf16 %v743_v16, %v742_v15  ;;  %v745_v22 = vld [vmem:[%s3772_s30 + $0x1d8] sm:$0xff]  ;;  %v2559_v23 = vpack.c.bf16 %v713_v20, %v712_v19  ;;  %v714_v25 = vld [vmem:[%s3772_s30 + $0xe0] sm:$0xff]  ;;  %v715_v26 = vld [vmem:[%s3772_s30 + $0xe8] sm:$0xff] }
 0x170   : > { %2581 = vmatpush1.bf16.msra.mxu1 %v2580_v31  ;;  %2534 = vmatprep.subr.bf16.mxu0 %v3287_v4  ;;  %v2607_v24 = vpack.c.bf16 %v745_v22, %v744_v21  ;;  %v746_v27 = vld [vmem:[%s3772_s30 + $0x1e0] sm:$0xff]  ;;  %v747_v28 = vld [vmem:[%s3772_s30 + $0x1e8] sm:$0xff]  ;;  %v2562_v29 = vpack.c.bf16 %v715_v26, %v714_v25  ;;  %v716_v31 = vld [vmem:[%s3772_s30 + $0xf0] sm:$0xff] }
 0x171   : > { %2582 = vmatprep.subr.bf16.mxu1 %v3287_v4  ;;  %v2610_v30 = vpack.c.bf16 %v747_v28, %v746_v27  ;;  %v717_v32 = vld [vmem:[%s3772_s30 + $0xf8] sm:$0xff]  ;;  %v748_v33 = vld [vmem:[%s3772_s30 + $0x1f0] sm:$0xff]  ;;  %v563_v39 = vld [vmem:[%s3764_s21 + $0x28] sm:$0xff] }
 0x172   : > { %v749_v34 = vld [vmem:[%s3772_s30 + $0x1f8] sm:$0xff]  ;;  %v2565_v35 = vpack.c.bf16 %v717_v32, %v716_v31  ;;  %v560_v38 = vld [vmem:[%s3764_s21 + $0x10] sm:$0xff]  ;;  %v562_v41 = vld [vmem:[%s3764_s21 + $0x20] sm:$0xff] }
 0x173   : > { %2536 = vmatpush1.bf16.msra.mxu0 %v2535_v36  ;;  %v2613_v36 = vpack.c.bf16 %v749_v34, %v748_v33  ;;  %v565_v40 = vld [vmem:[%s3764_s21 + $0x38] sm:$0xff]  ;;  %v564_v42 = vld [vmem:[%s3764_s21 + $0x30] sm:$0xff]  ;;  %v567_v43 = vld [vmem:[%s3764_s21 + $0x48] sm:$0xff] }
 0x174   : > { %2584 = vmatpush1.bf16.msra.mxu1 %v2583_v37  ;;  %2537 = vmatprep.subr.bf16.mxu0 %v3287_v4  ;;  %v558_v37 = vld [vmem:[%s3764_s21] sm:$0xff]  ;;  %v571_v46 = vld [vmem:[%s3764_s21 + $0x68] sm:$0xff]  ;;  %v573_v47 = vld [vmem:[%s3764_s21 + $0x78] sm:$0xff] }
 0x175   : > { %2585 = vmatprep.subr.bf16.mxu1 %v3287_v4  ;;  %v570_v48 = vld [vmem:[%s3764_s21 + $0x60] sm:$0xff]  ;;  %v572_v49 = vld [vmem:[%s3764_s21 + $0x70] sm:$0xff]  ;;  %v579_v54 = vld [vmem:[%s3764_s21 + $0xa8] sm:$0xff] }
 0x176   : > { %v574_v52 = vld [vmem:[%s3764_s21 + $0x80] sm:$0xff]  ;;  %v576_v53 = vld [vmem:[%s3764_s21 + $0x90] sm:$0xff]  ;;  %v581_v55 = vld [vmem:[%s3764_s21 + $0xb8] sm:$0xff] }
 0x177   : > { %2539 = vmatpush1.bf16.msra.mxu0 %v2538_v44  ;;  %v566_v44 = vld [vmem:[%s3764_s21 + $0x40] sm:$0xff]  ;;  %v583_v58 = vld [vmem:[%s3764_s21 + $0xc8] sm:$0xff]  ;;  %v585_v59 = vld [vmem:[%s3764_s21 + $0xd8] sm:$0xff] }
 0x178   : > { %2587 = vmatpush1.bf16.msra.mxu1 %v2586_v45  ;;  %2540 = vmatprep.subr.bf16.mxu0 %v3287_v4  ;;  %v568_v45 = vld [vmem:[%s3764_s21 + $0x50] sm:$0xff]  ;;  %v582_v60 = vld [vmem:[%s3764_s21 + $0xc0] sm:$0xff]  ;;  %v591_v2 = vld [vmem:[%s3764_s21 + $0x108] sm:$0xff] }
 0x179   : > { %2588 = vmatprep.subr.bf16.mxu1 %v3287_v4  ;;  %v584_v61 = vld [vmem:[%s3764_s21 + $0xd0] sm:$0xff]  ;;  %v586_v0 = vld [vmem:[%s3764_s21 + $0xe0] sm:$0xff]  ;;  %v593_v3 = vld [vmem:[%s3764_s21 + $0x118] sm:$0xff] }
 0x17a   : > { %v588_v1 = vld [vmem:[%s3764_s21 + $0xf0] sm:$0xff]  ;;  %v595_v7 = vld [vmem:[%s3764_s21 + $0x128] sm:$0xff]  ;;  %v597_v8 = vld [vmem:[%s3764_s21 + $0x138] sm:$0xff] }
 0x17b   : > { %2542 = vmatpush1.bf16.msra.mxu0 %v2541_v50  ;;  %v575_v50 = vld [vmem:[%s3764_s21 + $0x88] sm:$0xff]  ;;  %v594_v9 = vld [vmem:[%s3764_s21 + $0x120] sm:$0xff]  ;;  %v596_v10 = vld [vmem:[%s3764_s21 + $0x130] sm:$0xff] }
 0x17c   : > { %2590 = vmatpush1.bf16.msra.mxu1 %v2589_v51  ;;  %2543 = vmatprep.subr.bf16.mxu0 %v3287_v4  ;;  %v577_v51 = vld [vmem:[%s3764_s21 + $0x98] sm:$0xff]  ;;  %v598_v13 = vld [vmem:[%s3764_s21 + $0x140] sm:$0xff]  ;;  %v600_v14 = vld [vmem:[%s3764_s21 + $0x150] sm:$0xff] }
 0x17d   : > { %2591 = vmatprep.subr.bf16.mxu1 %v3287_v4  ;;  %v603_v15 = vld [vmem:[%s3764_s21 + $0x168] sm:$0xff]  ;;  %v605_v16 = vld [vmem:[%s3764_s21 + $0x178] sm:$0xff]  ;;  %v606_v21 = vld [vmem:[%s3764_s21 + $0x180] sm:$0xff] }
 0x17e   : > { %v607_v19 = vld [vmem:[%s3764_s21 + $0x188] sm:$0xff]  ;;  %v609_v20 = vld [vmem:[%s3764_s21 + $0x198] sm:$0xff]  ;;  %v608_v22 = vld [vmem:[%s3764_s21 + $0x190] sm:$0xff] }
 0x17f   : > { %2545 = vmatpush1.bf16.msra.mxu0 %v2544_v56  ;;  %v578_v56 = vld [vmem:[%s3764_s21 + $0xa0] sm:$0xff]  ;;  %v612_v26 = vld [vmem:[%s3764_s21 + $0x1b0] sm:$0xff]  ;;  %v615_v27 = vld [vmem:[%s3764_s21 + $0x1c8] sm:$0xff] }
 0x180   : > { %2593 = vmatpush1.bf16.msra.mxu1 %v2592_v57  ;;  %2546 = vmatprep.subr.bf16.mxu0 %v3287_v4  ;;  %v580_v57 = vld [vmem:[%s3764_s21 + $0xb0] sm:$0xff]  ;;  %v610_v25 = vld [vmem:[%s3764_s21 + $0x1a0] sm:$0xff]  ;;  %v617_v28 = vld [vmem:[%s3764_s21 + $0x1d8] sm:$0xff] }
 0x181   : > { %2594 = vmatprep.subr.bf16.mxu1 %v3287_v4  ;;  %v619_v31 = vld [vmem:[%s3764_s21 + $0x1e8] sm:$0xff]  ;;  %v621_v32 = vld [vmem:[%s3764_s21 + $0x1f8] sm:$0xff]  ;;  %v618_v33 = vld [vmem:[%s3764_s21 + $0x1e0] sm:$0xff] }
 0x182   : > { %v620_v34 = vld [vmem:[%s3764_s21 + $0x1f0] sm:$0xff] }
 0x183   : > { %2548 = vmatpush1.bf16.msra.mxu0 %v2547_v62  ;;  %v587_v62 = vld [vmem:[%s3764_s21 + $0xe8] sm:$0xff] }
 0x184   : > { %2596 = vmatpush1.bf16.msra.mxu1 %v2595_v63  ;;  %2549 = vmatprep.subr.bf16.mxu0 %v3287_v4  ;;  %v589_v63 = vld [vmem:[%s3764_s21 + $0xf8] sm:$0xff] }
 0x185   : > { %2597 = vmatprep.subr.bf16.mxu1 %v3287_v4 }
 0x187   : > { %2551 = vmatpush1.bf16.msra.mxu0 %v2550_v5  ;;  %v590_v5 = vld [vmem:[%s3764_s21 + $0x100] sm:$0xff] }
 0x188   : > { %2599 = vmatpush1.bf16.msra.mxu1 %v2598_v6  ;;  %2552 = vmatprep.subr.bf16.mxu0 %v3287_v4  ;;  %v592_v6 = vld [vmem:[%s3764_s21 + $0x110] sm:$0xff] }
 0x189   : > { %2600 = vmatprep.subr.bf16.mxu1 %v3287_v4 }
 0x18b   : > { %2554 = vmatpush1.bf16.msra.mxu0 %v2553_v11  ;;  %v599_v11 = vld [vmem:[%s3764_s21 + $0x148] sm:$0xff] }
 0x18c   : > { %2602 = vmatpush1.bf16.msra.mxu1 %v2601_v12  ;;  %2555 = vmatprep.subr.bf16.mxu0 %v3287_v4  ;;  %v601_v12 = vld [vmem:[%s3764_s21 + $0x158] sm:$0xff] }
 0x18d   : > { %2603 = vmatprep.subr.bf16.mxu1 %v3287_v4 }
 0x18f   : > { %2557 = vmatpush1.bf16.msra.mxu0 %v2556_v17  ;;  %v602_v17 = vld [vmem:[%s3764_s21 + $0x160] sm:$0xff] }
 0x190   : > { %2605 = vmatpush1.bf16.msra.mxu1 %v2604_v18  ;;  %2558 = vmatprep.subr.bf16.mxu0 %v3287_v4  ;;  %v604_v18 = vld [vmem:[%s3764_s21 + $0x170] sm:$0xff] }
 0x191   : > { %2606 = vmatprep.subr.bf16.mxu1 %v3287_v4 }
 0x193   : > { %2560 = vmatpush1.bf16.msra.mxu0 %v2559_v23  ;;  %v611_v23 = vld [vmem:[%s3764_s21 + $0x1a8] sm:$0xff] }
 0x194   : > { %2608 = vmatpush1.bf16.msra.mxu1 %v2607_v24  ;;  %2561 = vmatprep.subr.bf16.mxu0 %v3287_v4  ;;  %v613_v24 = vld [vmem:[%s3764_s21 + $0x1b8] sm:$0xff] }
 0x195   : > { %2609 = vmatprep.subr.bf16.mxu1 %v3287_v4 }
 0x197   : > { %2563 = vmatpush1.bf16.msra.mxu0 %v2562_v29  ;;  %v614_v29 = vld [vmem:[%s3764_s21 + $0x1c0] sm:$0xff] }
 0x198   : > { %2611 = vmatpush1.bf16.msra.mxu1 %v2610_v30  ;;  %2564 = vmatprep.subr.bf16.mxu0 %v3287_v4  ;;  %v616_v30 = vld [vmem:[%s3764_s21 + $0x1d0] sm:$0xff] }
 0x199   : > { %2612 = vmatprep.subr.bf16.mxu1 %v3287_v4  ;;  %v569_v4 = vld [vmem:[%s3764_s21 + $0x58] sm:$0xff] }
 0x19b   : > { %2566 = vmatpush1.bf16.msra.mxu0 %v2565_v35  ;;  %v623_v35 = vld [vmem:[%s3764_s21 + $0x208] sm:$0xff] }
 0x19c   : > { %2614 = vmatpush1.bf16.msra.mxu1 %v2613_v36  ;;  %v625_v36 = vld [vmem:[%s3764_s21 + $0x218] sm:$0xff] }
 0x19e   : > { %815 = vmatmul.mubr.f32.vlgmr.msra.gmra.mrb[0].mxu0 %v558_v37  ;;  %v622_v37 = vld [vmem:[%s3764_s21 + $0x200] sm:$0xff] }
 0x19f   : > { %1040 = vmatmul.mubr.f32.vlgmr.msra.gmra.mrb[0].mxu1 %v560_v38  ;;  %819 = vmatprep.mubr.f32.mxu0 %v563_v39  ;;  %v624_v38 = vld [vmem:[%s3764_s21 + $0x210] sm:$0xff]  ;;  %v627_v39 = vld [vmem:[%s3764_s21 + $0x228] sm:$0xff] }
 0x1a0   : > { %1044 = vmatprep.mubr.f32.mxu1 %v565_v40  ;;  %v629_v40 = vld [vmem:[%s3764_s21 + $0x238] sm:$0xff] }
 0x1a2   : > { %820 = vmatmul.mubr.f32.gmra.mrb[2].mxu0 %v562_v41  ;;  %v626_v41 = vld [vmem:[%s3764_s21 + $0x220] sm:$0xff] }
 0x1a3   : > { %1045 = vmatmul.mubr.f32.gmra.mrb[2].mxu1 %v564_v42  ;;  %824 = vmatprep.mubr.f32.mxu0 %v567_v43  ;;  %v628_v42 = vld [vmem:[%s3764_s21 + $0x230] sm:$0xff]  ;;  %v631_v43 = vld [vmem:[%s3764_s21 + $0x248] sm:$0xff] }
 0x1a4   : > { %1049 = vmatprep.mubr.f32.mxu1 %v569_v4  ;;  %v633_v4 = vld [vmem:[%s3764_s21 + $0x258] sm:$0xff] }
 0x1a6   : > { %825 = vmatmul.mubr.f32.gmra.mrb[4].mxu0 %v566_v44  ;;  %v630_v44 = vld [vmem:[%s3764_s21 + $0x240] sm:$0xff] }
 0x1a7   : > { %1050 = vmatmul.mubr.f32.gmra.mrb[4].mxu1 %v568_v45  ;;  %829 = vmatprep.mubr.f32.mxu0 %v571_v46  ;;  %v632_v45 = vld [vmem:[%s3764_s21 + $0x250] sm:$0xff]  ;;  %v635_v46 = vld [vmem:[%s3764_s21 + $0x268] sm:$0xff] }
 0x1a8   : > { %1054 = vmatprep.mubr.f32.mxu1 %v573_v47  ;;  %v637_v47 = vld [vmem:[%s3764_s21 + $0x278] sm:$0xff] }
 0x1aa   : > { %830 = vmatmul.mubr.f32.gmra.mrb[6].mxu0 %v570_v48  ;;  %v634_v48 = vld [vmem:[%s3764_s21 + $0x260] sm:$0xff] }
 0x1ab   : > { %1055 = vmatmul.mubr.f32.gmra.mrb[6].mxu1 %v572_v49  ;;  %834 = vmatprep.mubr.f32.mxu0 %v575_v50  ;;  %v636_v49 = vld [vmem:[%s3764_s21 + $0x270] sm:$0xff]  ;;  %v639_v50 = vld [vmem:[%s3764_s21 + $0x288] sm:$0xff] }
 0x1ac   : > { %1059 = vmatprep.mubr.f32.mxu1 %v577_v51  ;;  %v641_v51 = vld [vmem:[%s3764_s21 + $0x298] sm:$0xff] }
 0x1ae   : > { %835 = vmatmul.mubr.f32.gmra.mrb[8].mxu0 %v574_v52  ;;  %v638_v52 = vld [vmem:[%s3764_s21 + $0x280] sm:$0xff] }
 0x1af   : > { %1060 = vmatmul.mubr.f32.gmra.mrb[8].mxu1 %v576_v53  ;;  %839 = vmatprep.mubr.f32.mxu0 %v579_v54  ;;  %v640_v53 = vld [vmem:[%s3764_s21 + $0x290] sm:$0xff]  ;;  %v643_v54 = vld [vmem:[%s3764_s21 + $0x2a8] sm:$0xff] }
 0x1b0   : > { %1064 = vmatprep.mubr.f32.mxu1 %v581_v55  ;;  %v645_v55 = vld [vmem:[%s3764_s21 + $0x2b8] sm:$0xff] }
 0x1b2   : > { %840 = vmatmul.mubr.f32.gmra.mrb[10].mxu0 %v578_v56  ;;  %v642_v56 = vld [vmem:[%s3764_s21 + $0x2a0] sm:$0xff] }
 0x1b3   : > { %1065 = vmatmul.mubr.f32.gmra.mrb[10].mxu1 %v580_v57  ;;  %844 = vmatprep.mubr.f32.mxu0 %v583_v58  ;;  %v644_v57 = vld [vmem:[%s3764_s21 + $0x2b0] sm:$0xff]  ;;  %v647_v58 = vld [vmem:[%s3764_s21 + $0x2c8] sm:$0xff] }
 0x1b4   : > { %1069 = vmatprep.mubr.f32.mxu1 %v585_v59  ;;  %v649_v59 = vld [vmem:[%s3764_s21 + $0x2d8] sm:$0xff] }
 0x1b6   : > { %845 = vmatmul.mubr.f32.gmra.mrb[12].mxu0 %v582_v60  ;;  %v646_v60 = vld [vmem:[%s3764_s21 + $0x2c0] sm:$0xff] }
 0x1b7   : > { %1070 = vmatmul.mubr.f32.gmra.mrb[12].mxu1 %v584_v61  ;;  %849 = vmatprep.mubr.f32.mxu0 %v587_v62  ;;  %v648_v61 = vld [vmem:[%s3764_s21 + $0x2d0] sm:$0xff]  ;;  %v651_v62 = vld [vmem:[%s3764_s21 + $0x2e8] sm:$0xff] }
 0x1b8   : > { %1074 = vmatprep.mubr.f32.mxu1 %v589_v63  ;;  %v653_v63 = vld [vmem:[%s3764_s21 + $0x2f8] sm:$0xff] }
 0x1ba   : > { %850 = vmatmul.mubr.f32.gmra.mrb[14].mxu0 %v586_v0  ;;  %v650_v0 = vld [vmem:[%s3764_s21 + $0x2e0] sm:$0xff] }
 0x1bb   : > { %1075 = vmatmul.mubr.f32.gmra.mrb[14].mxu1 %v588_v1  ;;  %854 = vmatprep.mubr.f32.mxu0 %v591_v2  ;;  %v652_v1 = vld [vmem:[%s3764_s21 + $0x2f0] sm:$0xff]  ;;  %v655_v2 = vld [vmem:[%s3764_s21 + $0x308] sm:$0xff] }
 0x1bc   : > { %1079 = vmatprep.mubr.f32.mxu1 %v593_v3  ;;  %v657_v3 = vld [vmem:[%s3764_s21 + $0x318] sm:$0xff] }
 0x1be   : > { %855 = vmatmul.mubr.f32.gmra.mrb[16].mxu0 %v590_v5  ;;  %v654_v5 = vld [vmem:[%s3764_s21 + $0x300] sm:$0xff] }
 0x1bf   : > { %1080 = vmatmul.mubr.f32.gmra.mrb[16].mxu1 %v592_v6  ;;  %859 = vmatprep.mubr.f32.mxu0 %v595_v7  ;;  %v656_v6 = vld [vmem:[%s3764_s21 + $0x310] sm:$0xff]  ;;  %v659_v7 = vld [vmem:[%s3764_s21 + $0x328] sm:$0xff] }
 0x1c0   : > { %1084 = vmatprep.mubr.f32.mxu1 %v597_v8  ;;  %v661_v8 = vld [vmem:[%s3764_s21 + $0x338] sm:$0xff] }
 0x1c2   : > { %860 = vmatmul.mubr.f32.gmra.mrb[18].mxu0 %v594_v9  ;;  %v658_v9 = vld [vmem:[%s3764_s21 + $0x320] sm:$0xff] }
 0x1c3   : > { %1085 = vmatmul.mubr.f32.gmra.mrb[18].mxu1 %v596_v10  ;;  %864 = vmatprep.mubr.f32.mxu0 %v599_v11  ;;  %v660_v10 = vld [vmem:[%s3764_s21 + $0x330] sm:$0xff]  ;;  %v663_v11 = vld [vmem:[%s3764_s21 + $0x348] sm:$0xff] }
 0x1c4   : > { %1089 = vmatprep.mubr.f32.mxu1 %v601_v12  ;;  %v665_v12 = vld [vmem:[%s3764_s21 + $0x358] sm:$0xff] }
 0x1c6   : > { %865 = vmatmul.mubr.f32.gmra.mrb[20].mxu0 %v598_v13  ;;  %v662_v13 = vld [vmem:[%s3764_s21 + $0x340] sm:$0xff] }
 0x1c7   : > { %1090 = vmatmul.mubr.f32.gmra.mrb[20].mxu1 %v600_v14  ;;  %869 = vmatprep.mubr.f32.mxu0 %v603_v15  ;;  %v664_v14 = vld [vmem:[%s3764_s21 + $0x350] sm:$0xff]  ;;  %v667_v15 = vld [vmem:[%s3764_s21 + $0x368] sm:$0xff] }
 0x1c8   : > { %1094 = vmatprep.mubr.f32.mxu1 %v605_v16  ;;  %v669_v16 = vld [vmem:[%s3764_s21 + $0x378] sm:$0xff] }
 0x1ca   : > { %870 = vmatmul.mubr.f32.gmra.mrb[22].mxu0 %v602_v17  ;;  %v666_v17 = vld [vmem:[%s3764_s21 + $0x360] sm:$0xff] }
 0x1cb   : > { %1095 = vmatmul.mubr.f32.gmra.mrb[22].mxu1 %v604_v18  ;;  %874 = vmatprep.mubr.f32.mxu0 %v607_v19  ;;  %v668_v18 = vld [vmem:[%s3764_s21 + $0x370] sm:$0xff]  ;;  %v671_v19 = vld [vmem:[%s3764_s21 + $0x388] sm:$0xff] }
 0x1cc   : > { %1099 = vmatprep.mubr.f32.mxu1 %v609_v20  ;;  %v673_v20 = vld [vmem:[%s3764_s21 + $0x398] sm:$0xff] }
 0x1ce   : > { %875 = vmatmul.mubr.f32.gmra.mrb[24].mxu0 %v606_v21  ;;  %v670_v21 = vld [vmem:[%s3764_s21 + $0x380] sm:$0xff] }
 0x1cf   : > { %1100 = vmatmul.mubr.f32.gmra.mrb[24].mxu1 %v608_v22  ;;  %879 = vmatprep.mubr.f32.mxu0 %v611_v23  ;;  %v672_v22 = vld [vmem:[%s3764_s21 + $0x390] sm:$0xff]  ;;  %v675_v23 = vld [vmem:[%s3764_s21 + $0x3a8] sm:$0xff] }
 0x1d0   : > { %1104 = vmatprep.mubr.f32.mxu1 %v613_v24  ;;  %v677_v24 = vld [vmem:[%s3764_s21 + $0x3b8] sm:$0xff] }
 0x1d2   : > { %880 = vmatmul.mubr.f32.gmra.mrb[26].mxu0 %v610_v25  ;;  %v674_v25 = vld [vmem:[%s3764_s21 + $0x3a0] sm:$0xff] }
 0x1d3   : > { %1105 = vmatmul.mubr.f32.gmra.mrb[26].mxu1 %v612_v26  ;;  %884 = vmatprep.mubr.f32.mxu0 %v615_v27  ;;  %v676_v26 = vld [vmem:[%s3764_s21 + $0x3b0] sm:$0xff]  ;;  %v679_v27 = vld [vmem:[%s3764_s21 + $0x3c8] sm:$0xff] }
 0x1d4   : > { %1109 = vmatprep.mubr.f32.mxu1 %v617_v28  ;;  %v681_v28 = vld [vmem:[%s3764_s21 + $0x3d8] sm:$0xff] }
 0x1d6   : > { %885 = vmatmul.mubr.f32.gmra.mrb[28].mxu0 %v614_v29  ;;  %v678_v29 = vld [vmem:[%s3764_s21 + $0x3c0] sm:$0xff] }
 0x1d7   : > { %1110 = vmatmul.mubr.f32.gmra.mrb[28].mxu1 %v616_v30  ;;  %889 = vmatprep.mubr.f32.mxu0 %v619_v31  ;;  %v680_v30 = vld [vmem:[%s3764_s21 + $0x3d0] sm:$0xff]  ;;  %v683_v31 = vld [vmem:[%s3764_s21 + $0x3e8] sm:$0xff] }
 0x1d8   : > { %1114 = vmatprep.mubr.f32.mxu1 %v621_v32  ;;  %v685_v32 = vld [vmem:[%s3764_s21 + $0x3f8] sm:$0xff] }
 0x1da   : > { %890 = vmatmul.mubr.f32.gmra.mrb[30].mxu0 %v618_v33  ;;  %v682_v33 = vld [vmem:[%s3764_s21 + $0x3e0] sm:$0xff] }
 0x1db   : > { %1115 = vmatmul.mubr.f32.gmra.mrb[30].mxu1 %v620_v34  ;;  %894 = vmatprep.mubr.f32.mxu0 %v623_v35  ;;  %v684_v34 = vld [vmem:[%s3764_s21 + $0x3f0] sm:$0xff] }
 0x1dc   : > { %1119 = vmatprep.mubr.f32.mxu1 %v625_v36  ;;  %v526_v36 = vld [vmem:[#allocation2] sm:$0xff] }
 0x1de   : > { %895 = vmatmul.mubr.f32.gmra.mrb[32].mxu0 %v622_v37 }
 0x1df   : > { %1120 = vmatmul.mubr.f32.gmra.mrb[32].mxu1 %v624_v38  ;;  %899 = vmatprep.mubr.f32.mxu0 %v627_v39 }
 0x1e0   : > { %1124 = vmatprep.mubr.f32.mxu1 %v629_v40 }
 0x1e2   : > { %900 = vmatmul.mubr.f32.gmra.mrb[34].mxu0 %v626_v41 }
 0x1e3   : > { %1125 = vmatmul.mubr.f32.gmra.mrb[34].mxu1 %v628_v42  ;;  %904 = vmatprep.mubr.f32.mxu0 %v631_v43  ;;  %v527_v43 = vld [vmem:[#allocation2 + $0x8] sm:$0xff] }
 0x1e4   : > { %1129 = vmatprep.mubr.f32.mxu1 %v633_v4 }
 0x1e6   : > { %905 = vmatmul.mubr.f32.gmra.mrb[36].mxu0 %v630_v44 }
 0x1e7   : > { %1130 = vmatmul.mubr.f32.gmra.mrb[36].mxu1 %v632_v45  ;;  %909 = vmatprep.mubr.f32.mxu0 %v635_v46 }
 0x1e8   : > { %1134 = vmatprep.mubr.f32.mxu1 %v637_v47 }
 0x1ea   : > { %910 = vmatmul.mubr.f32.gmra.mrb[38].mxu0 %v634_v48 }
 0x1eb   : > { %1135 = vmatmul.mubr.f32.gmra.mrb[38].mxu1 %v636_v49  ;;  %914 = vmatprep.mubr.f32.mxu0 %v639_v50  ;;  %v528_v49 = vld [vmem:[#allocation2 + $0x10] sm:$0xff] }
 0x1ec   : > { %1139 = vmatprep.mubr.f32.mxu1 %v641_v51 }
 0x1ee   : > { %915 = vmatmul.mubr.f32.gmra.mrb[40].mxu0 %v638_v52 }
 0x1ef   : > { %1140 = vmatmul.mubr.f32.gmra.mrb[40].mxu1 %v640_v53  ;;  %919 = vmatprep.mubr.f32.mxu0 %v643_v54 }
 0x1f0   : > { %1144 = vmatprep.mubr.f32.mxu1 %v645_v55 }
 0x1f2   : > { %920 = vmatmul.mubr.f32.gmra.mrb[42].mxu0 %v642_v56  ;;  %v529_v56 = vld [vmem:[#allocation2 + $0x18] sm:$0xff] }
 0x1f3   : > { %1145 = vmatmul.mubr.f32.gmra.mrb[42].mxu1 %v644_v57  ;;  %924 = vmatprep.mubr.f32.mxu0 %v647_v58 }
 0x1f4   : > { %1149 = vmatprep.mubr.f32.mxu1 %v649_v59 }
 0x1f6   : > { %925 = vmatmul.mubr.f32.gmra.mrb[44].mxu0 %v646_v60 }
 0x1f7   : > { %1150 = vmatmul.mubr.f32.gmra.mrb[44].mxu1 %v648_v61  ;;  %929 = vmatprep.mubr.f32.mxu0 %v651_v62 }
 0x1f8   : > { %1154 = vmatprep.mubr.f32.mxu1 %v653_v63  ;;  %v530_v63 = vld [vmem:[#allocation2 + $0x20] sm:$0xff] }
 0x1fa   : > { %930 = vmatmul.mubr.f32.gmra.mrb[46].mxu0 %v650_v0 }
 0x1fb   : > { %1155 = vmatmul.mubr.f32.gmra.mrb[46].mxu1 %v652_v1  ;;  %934 = vmatprep.mubr.f32.mxu0 %v655_v2 }
 0x1fc   : > { %1159 = vmatprep.mubr.f32.mxu1 %v657_v3 }
 0x1fe   : > { %935 = vmatmul.mubr.f32.gmra.mrb[48].mxu0 %v654_v5 }
 0x1ff   : > { %1160 = vmatmul.mubr.f32.gmra.mrb[48].mxu1 %v656_v6  ;;  %939 = vmatprep.mubr.f32.mxu0 %v659_v7  ;;  %v531_v7 = vld [vmem:[#allocation2 + $0x28] sm:$0xff] }
 0x200   : > { %1164 = vmatprep.mubr.f32.mxu1 %v661_v8 }
 0x202   : > { %940 = vmatmul.mubr.f32.gmra.mrb[50].mxu0 %v658_v9 }
 0x203   : > { %1165 = vmatmul.mubr.f32.gmra.mrb[50].mxu1 %v660_v10  ;;  %944 = vmatprep.mubr.f32.mxu0 %v663_v11 }
 0x204   : > { %1169 = vmatprep.mubr.f32.mxu1 %v665_v12 }
 0x206   : > { %945 = vmatmul.mubr.f32.gmra.mrb[52].mxu0 %v662_v13 }
 0x207   : > { %1170 = vmatmul.mubr.f32.gmra.mrb[52].mxu1 %v664_v14  ;;  %949 = vmatprep.mubr.f32.mxu0 %v667_v15  ;;  %v532_v14 = vld [vmem:[#allocation2 + $0x30] sm:$0xff] }
 0x208   : > { %1174 = vmatprep.mubr.f32.mxu1 %v669_v16 }
 0x20a   : > { %950 = vmatmul.mubr.f32.gmra.mrb[54].mxu0 %v666_v17 }
 0x20b   : > { %1175 = vmatmul.mubr.f32.gmra.mrb[54].mxu1 %v668_v18  ;;  %954 = vmatprep.mubr.f32.mxu0 %v671_v19 }
 0x20c   : > { %1179 = vmatprep.mubr.f32.mxu1 %v673_v20 }
 0x20e   : > { %955 = vmatmul.mubr.f32.gmra.mrb[56].mxu0 %v670_v21  ;;  %v533_v21 = vld [vmem:[#allocation2 + $0x38] sm:$0xff] }
 0x20f   : > { %1180 = vmatmul.mubr.f32.gmra.mrb[56].mxu1 %v672_v22  ;;  %959 = vmatprep.mubr.f32.mxu0 %v675_v23 }
 0x210   : > { %1184 = vmatprep.mubr.f32.mxu1 %v677_v24 }
 0x212   : > { %960 = vmatmul.mubr.f32.gmra.mrb[58].mxu0 %v674_v25 }
 0x213   : > { %1185 = vmatmul.mubr.f32.gmra.mrb[58].mxu1 %v676_v26  ;;  %964 = vmatprep.mubr.f32.mxu0 %v679_v27 }
 0x214   : > { %1189 = vmatprep.mubr.f32.mxu1 %v681_v28  ;;  %v534_v28 = vld [vmem:[#allocation2 + $0x40] sm:$0xff] }
 0x216   : > { %965 = vmatmul.mubr.f32.gmra.mrb[60].mxu0 %v678_v29 }
 0x217   : > { %1190 = vmatmul.mubr.f32.gmra.mrb[60].mxu1 %v680_v30  ;;  %969 = vmatprep.mubr.f32.mxu0 %v683_v31 }
 0x218   : > { %1194 = vmatprep.mubr.f32.mxu1 %v685_v32 }
 0x21a   : > { %970 = vmatmul.mubr.f32.gmra.mrb[62].mxu0 %v682_v33 }
 0x21b   : > { %1195 = vmatmul.mubr.f32.gmra.mrb[62].mxu1 %v684_v34 }
 0x271   : > { %v816_v35 = vpop.f32.mrb[0].mxu0 }
 0x272   : > { %v1041_v37 = vpop.f32.mrb[0].mxu1  ;;  %v818_v38 = vpop.f32.mrb[1].mxu0 }
 0x273   : > { %v1042_v39 = vadd.f32 %v1041_v37, %v816_v35  ;;  %v1043_v40 = vpop.f32.mrb[1].mxu1  ;;  %v535_v35 = vld [vmem:[#allocation2 + $0x48] sm:$0xff] }
 0x275   : > { %v1200_v41 = vadd.f32 %v1042_v39, %v526_v36  ;;  %v821_v42 = vpop.f32.mrb[2].mxu0 }
 0x276   : > { %v1046_v4 = vpop.f32.mrb[2].mxu1  ;;  %v823_v44 = vpop.f32.mrb[3].mxu0 }
 0x277   : > { %1232 = vst [vmem:[#allocation2] sm:$0xff] %v1200_v41  ;;  %v1047_v45 = vadd.f32 %v1046_v4, %v821_v42  ;;  %v1048_v46 = vpop.f32.mrb[3].mxu1  ;;  %v536_v42 = vld [vmem:[#allocation2 + $0x50] sm:$0xff] }
 0x279   : > { %v1201_v47 = vadd.f32 %v1047_v45, %v527_v43  ;;  %v826_v48 = vpop.f32.mrb[4].mxu0 }
 0x27a   : > { %v1051_v50 = vpop.f32.mrb[4].mxu1  ;;  %v828_v51 = vpop.f32.mrb[5].mxu0 }
 0x27b   : > { %1233 = vst [vmem:[#allocation2 + $0x8] sm:$0xff] %v1201_v47  ;;  %v1052_v52 = vadd.f32 %v1051_v50, %v826_v48  ;;  %v1053_v53 = vpop.f32.mrb[5].mxu1  ;;  %v537_v48 = vld [vmem:[#allocation2 + $0x58] sm:$0xff] }
 0x27d   : > { %v1202_v54 = vadd.f32 %v1052_v52, %v528_v49  ;;  %v831_v55 = vpop.f32.mrb[6].mxu0 }
 0x27e   : > { %v1056_v57 = vpop.f32.mrb[6].mxu1  ;;  %v833_v58 = vpop.f32.mrb[7].mxu0 }
 0x27f   : > { %1234 = vst [vmem:[#allocation2 + $0x10] sm:$0xff] %v1202_v54  ;;  %v1057_v59 = vadd.f32 %v1056_v57, %v831_v55  ;;  %v1058_v60 = vpop.f32.mrb[7].mxu1  ;;  %v538_v55 = vld [vmem:[#allocation2 + $0x60] sm:$0xff] }
 0x281   : > { %v1203_v61 = vadd.f32 %v1057_v59, %v529_v56  ;;  %v836_v62 = vpop.f32.mrb[8].mxu0 }
 0x282   : > { %v1061_v0 = vpop.f32.mrb[8].mxu1  ;;  %v838_v1 = vpop.f32.mrb[9].mxu0 }
 0x283   : > { %1235 = vst [vmem:[#allocation2 + $0x18] sm:$0xff] %v1203_v61  ;;  %v1062_v2 = vadd.f32 %v1061_v0, %v836_v62  ;;  %v1063_v3 = vpop.f32.mrb[9].mxu1  ;;  %v539_v62 = vld [vmem:[#allocation2 + $0x68] sm:$0xff] }
 0x285   : > { %v1204_v5 = vadd.f32 %v1062_v2, %v530_v63  ;;  %v841_v6 = vpop.f32.mrb[10].mxu0 }
 0x286   : > { %v1066_v8 = vpop.f32.mrb[10].mxu1  ;;  %v843_v9 = vpop.f32.mrb[11].mxu0 }
 0x287   : > { %1236 = vst [vmem:[#allocation2 + $0x20] sm:$0xff] %v1204_v5  ;;  %v1067_v10 = vadd.f32 %v1066_v8, %v841_v6  ;;  %v1068_v11 = vpop.f32.mrb[11].mxu1  ;;  %v540_v6 = vld [vmem:[#allocation2 + $0x70] sm:$0xff] }
 0x289   : > { %v1205_v12 = vadd.f32 %v1067_v10, %v531_v7  ;;  %v846_v13 = vpop.f32.mrb[12].mxu0 }
 0x28a   : > { %v1071_v15 = vpop.f32.mrb[12].mxu1  ;;  %v848_v16 = vpop.f32.mrb[13].mxu0 }
 0x28b   : > { %1237 = vst [vmem:[#allocation2 + $0x28] sm:$0xff] %v1205_v12  ;;  %v1072_v17 = vadd.f32 %v1071_v15, %v846_v13  ;;  %v1073_v18 = vpop.f32.mrb[13].mxu1  ;;  %v541_v13 = vld [vmem:[#allocation2 + $0x78] sm:$0xff] }
 0x28d   : > { %v1206_v19 = vadd.f32 %v1072_v17, %v532_v14  ;;  %v851_v20 = vpop.f32.mrb[14].mxu0 }
 0x28e   : > { %v1076_v22 = vpop.f32.mrb[14].mxu1  ;;  %v853_v23 = vpop.f32.mrb[15].mxu0 }
 0x28f   : > { %1238 = vst [vmem:[#allocation2 + $0x30] sm:$0xff] %v1206_v19  ;;  %v1077_v24 = vadd.f32 %v1076_v22, %v851_v20  ;;  %v1078_v25 = vpop.f32.mrb[15].mxu1  ;;  %v542_v20 = vld [vmem:[#allocation2 + $0x80] sm:$0xff] }
 0x291   : > { %v1207_v26 = vadd.f32 %v1077_v24, %v533_v21  ;;  %v856_v27 = vpop.f32.mrb[16].mxu0 }
 0x292   : > { %v1081_v29 = vpop.f32.mrb[16].mxu1  ;;  %v858_v30 = vpop.f32.mrb[17].mxu0 }
 0x293   : > { %1239 = vst [vmem:[#allocation2 + $0x38] sm:$0xff] %v1207_v26  ;;  %v1082_v31 = vadd.f32 %v1081_v29, %v856_v27  ;;  %v1083_v32 = vpop.f32.mrb[17].mxu1  ;;  %v543_v27 = vld [vmem:[#allocation2 + $0x88] sm:$0xff] }
 0x295   : > { %v1208_v33 = vadd.f32 %v1082_v31, %v534_v28  ;;  %v861_v34 = vpop.f32.mrb[18].mxu0 }
 0x296   : > { %v1086_v36 = vpop.f32.mrb[18].mxu1  ;;  %v863_v37 = vpop.f32.mrb[19].mxu0 }
 0x297   : > { %1240 = vst [vmem:[#allocation2 + $0x40] sm:$0xff] %v1208_v33  ;;  %v1087_v38 = vadd.f32 %v1086_v36, %v861_v34  ;;  %v1088_v39 = vpop.f32.mrb[19].mxu1  ;;  %v544_v34 = vld [vmem:[#allocation2 + $0x90] sm:$0xff] }
 0x299   : > { %v1209_v40 = vadd.f32 %v1087_v38, %v535_v35  ;;  %v866_v41 = vpop.f32.mrb[20].mxu0 }
 0x29a   : > { %v1091_v43 = vpop.f32.mrb[20].mxu1  ;;  %v868_v4 = vpop.f32.mrb[21].mxu0 }
 0x29b   : > { %1241 = vst [vmem:[#allocation2 + $0x48] sm:$0xff] %v1209_v40  ;;  %v1092_v44 = vadd.f32 %v1091_v43, %v866_v41  ;;  %v1093_v45 = vpop.f32.mrb[21].mxu1  ;;  %v545_v41 = vld [vmem:[#allocation2 + $0x98] sm:$0xff] }
 0x29d   : > { %v1210_v46 = vadd.f32 %v1092_v44, %v536_v42  ;;  %v871_v47 = vpop.f32.mrb[22].mxu0 }
 0x29e   : > { %v1096_v49 = vpop.f32.mrb[22].mxu1  ;;  %v873_v50 = vpop.f32.mrb[23].mxu0 }
 0x29f   : > { %1242 = vst [vmem:[#allocation2 + $0x50] sm:$0xff] %v1210_v46  ;;  %v1097_v51 = vadd.f32 %v1096_v49, %v871_v47  ;;  %v1098_v52 = vpop.f32.mrb[23].mxu1  ;;  %v546_v47 = vld [vmem:[#allocation2 + $0xa0] sm:$0xff] }
 0x2a1   : > { %v1211_v53 = vadd.f32 %v1097_v51, %v537_v48  ;;  %v876_v54 = vpop.f32.mrb[24].mxu0 }
 0x2a2   : > { %v1101_v56 = vpop.f32.mrb[24].mxu1  ;;  %v878_v57 = vpop.f32.mrb[25].mxu0 }
 0x2a3   : > { %1243 = vst [vmem:[#allocation2 + $0x58] sm:$0xff] %v1211_v53  ;;  %v1102_v58 = vadd.f32 %v1101_v56, %v876_v54  ;;  %v1103_v59 = vpop.f32.mrb[25].mxu1  ;;  %v547_v54 = vld [vmem:[#allocation2 + $0xa8] sm:$0xff] }
 0x2a5   : > { %v1212_v60 = vadd.f32 %v1102_v58, %v538_v55  ;;  %v881_v61 = vpop.f32.mrb[26].mxu0 }
 0x2a6   : > { %v1106_v63 = vpop.f32.mrb[26].mxu1  ;;  %v883_v0 = vpop.f32.mrb[27].mxu0 }
 0x2a7   : > { %1244 = vst [vmem:[#allocation2 + $0x60] sm:$0xff] %v1212_v60  ;;  %v1107_v1 = vadd.f32 %v1106_v63, %v881_v61  ;;  %v1108_v2 = vpop.f32.mrb[27].mxu1  ;;  %v548_v61 = vld [vmem:[#allocation2 + $0xb0] sm:$0xff] }
 0x2a9   : > { %v1213_v3 = vadd.f32 %v1107_v1, %v539_v62  ;;  %v886_v5 = vpop.f32.mrb[28].mxu0 }
 0x2aa   : > { %v1111_v7 = vpop.f32.mrb[28].mxu1  ;;  %v888_v8 = vpop.f32.mrb[29].mxu0 }
 0x2ab   : > { %1245 = vst [vmem:[#allocation2 + $0x68] sm:$0xff] %v1213_v3  ;;  %v1112_v9 = vadd.f32 %v1111_v7, %v886_v5  ;;  %v1113_v10 = vpop.f32.mrb[29].mxu1  ;;  %v549_v5 = vld [vmem:[#allocation2 + $0xb8] sm:$0xff] }
 0x2ad   : > { %v1214_v11 = vadd.f32 %v1112_v9, %v540_v6  ;;  %v891_v12 = vpop.f32.mrb[30].mxu0 }
 0x2ae   : > { %v1116_v14 = vpop.f32.mrb[30].mxu1  ;;  %v893_v15 = vpop.f32.mrb[31].mxu0 }
 0x2af   : > { %1246 = vst [vmem:[#allocation2 + $0x70] sm:$0xff] %v1214_v11  ;;  %v1117_v16 = vadd.f32 %v1116_v14, %v891_v12  ;;  %v1118_v17 = vpop.f32.mrb[31].mxu1  ;;  %v550_v12 = vld [vmem:[#allocation2 + $0xc0] sm:$0xff] }
 0x2b1   : > { %v1215_v18 = vadd.f32 %v1117_v16, %v541_v13  ;;  %v896_v19 = vpop.f32.mrb[32].mxu0 }
 0x2b2   : > { %v1121_v21 = vpop.f32.mrb[32].mxu1  ;;  %v898_v22 = vpop.f32.mrb[33].mxu0 }
 0x2b3   : > { %1247 = vst [vmem:[#allocation2 + $0x78] sm:$0xff] %v1215_v18  ;;  %v1122_v23 = vadd.f32 %v1121_v21, %v896_v19  ;;  %v1123_v24 = vpop.f32.mrb[33].mxu1  ;;  %v551_v19 = vld [vmem:[#allocation2 + $0xc8] sm:$0xff] }
 0x2b5   : > { %v1216_v25 = vadd.f32 %v1122_v23, %v542_v20  ;;  %v901_v26 = vpop.f32.mrb[34].mxu0 }
 0x2b6   : > { %v1126_v28 = vpop.f32.mrb[34].mxu1  ;;  %v903_v29 = vpop.f32.mrb[35].mxu0 }
 0x2b7   : > { %1248 = vst [vmem:[#allocation2 + $0x80] sm:$0xff] %v1216_v25  ;;  %v1127_v30 = vadd.f32 %v1126_v28, %v901_v26  ;;  %v1128_v31 = vpop.f32.mrb[35].mxu1  ;;  %v552_v26 = vld [vmem:[#allocation2 + $0xd0] sm:$0xff] }
 0x2b9   : > { %v1217_v32 = vadd.f32 %v1127_v30, %v543_v27  ;;  %v906_v33 = vpop.f32.mrb[36].mxu0 }
 0x2ba   : > { %v1131_v35 = vpop.f32.mrb[36].mxu1  ;;  %v908_v36 = vpop.f32.mrb[37].mxu0 }
 0x2bb   : > { %1249 = vst [vmem:[#allocation2 + $0x88] sm:$0xff] %v1217_v32  ;;  %v1132_v37 = vadd.f32 %v1131_v35, %v906_v33  ;;  %v1133_v38 = vpop.f32.mrb[37].mxu1  ;;  %v553_v33 = vld [vmem:[#allocation2 + $0xd8] sm:$0xff] }
 0x2bd   : > { %v1218_v39 = vadd.f32 %v1132_v37, %v544_v34  ;;  %v911_v40 = vpop.f32.mrb[38].mxu0 }
 0x2be   : > { %v1136_v42 = vpop.f32.mrb[38].mxu1  ;;  %v913_v43 = vpop.f32.mrb[39].mxu0 }
 0x2bf   : > { %1250 = vst [vmem:[#allocation2 + $0x90] sm:$0xff] %v1218_v39  ;;  %v1137_v4 = vadd.f32 %v1136_v42, %v911_v40  ;;  %v1138_v44 = vpop.f32.mrb[39].mxu1  ;;  %v554_v40 = vld [vmem:[#allocation2 + $0xe0] sm:$0xff] }
 0x2c1   : > { %v1219_v45 = vadd.f32 %v1137_v4, %v545_v41  ;;  %v916_v46 = vpop.f32.mrb[40].mxu0 }
 0x2c2   : > { %v1141_v48 = vpop.f32.mrb[40].mxu1  ;;  %v918_v49 = vpop.f32.mrb[41].mxu0 }
 0x2c3   : > { %1251 = vst [vmem:[#allocation2 + $0x98] sm:$0xff] %v1219_v45  ;;  %v1142_v50 = vadd.f32 %v1141_v48, %v916_v46  ;;  %v1143_v51 = vpop.f32.mrb[41].mxu1  ;;  %v555_v46 = vld [vmem:[#allocation2 + $0xe8] sm:$0xff] }
 0x2c5   : > { %v1220_v52 = vadd.f32 %v1142_v50, %v546_v47  ;;  %v921_v53 = vpop.f32.mrb[42].mxu0 }
 0x2c6   : > { %v1146_v55 = vpop.f32.mrb[42].mxu1  ;;  %v923_v56 = vpop.f32.mrb[43].mxu0 }
 0x2c7   : > { %1252 = vst [vmem:[#allocation2 + $0xa0] sm:$0xff] %v1220_v52  ;;  %v1147_v57 = vadd.f32 %v1146_v55, %v921_v53  ;;  %v1148_v58 = vpop.f32.mrb[43].mxu1  ;;  %v556_v53 = vld [vmem:[#allocation2 + $0xf0] sm:$0xff] }
 0x2c9   : > { %v1221_v59 = vadd.f32 %v1147_v57, %v547_v54  ;;  %v926_v60 = vpop.f32.mrb[44].mxu0 }
 0x2ca   : > { %v1151_v62 = vpop.f32.mrb[44].mxu1  ;;  %v928_v63 = vpop.f32.mrb[45].mxu0 }
 0x2cb   : > { %1253 = vst [vmem:[#allocation2 + $0xa8] sm:$0xff] %v1221_v59  ;;  %v1152_v0 = vadd.f32 %v1151_v62, %v926_v60  ;;  %v1153_v1 = vpop.f32.mrb[45].mxu1  ;;  %v557_v60 = vld [vmem:[#allocation2 + $0xf8] sm:$0xff] }
 0x2cd   : > { %v1222_v2 = vadd.f32 %v1152_v0, %v548_v61  ;;  %v931_v3 = vpop.f32.mrb[46].mxu0 }
 0x2ce   : > { %v1156_v6 = vpop.f32.mrb[46].mxu1  ;;  %v933_v7 = vpop.f32.mrb[47].mxu0 }
 0x2cf   : > { %1254 = vst [vmem:[#allocation2 + $0xb0] sm:$0xff] %v1222_v2  ;;  %v1157_v8 = vadd.f32 %v1156_v6, %v931_v3  ;;  %v1158_v9 = vpop.f32.mrb[47].mxu1  ;;  %v1364_v2 = vld [vmem:[#allocation9] sm:$0xff] (!%p2250_p3)  ;;  %v1365_v3 = vld [vmem:[#allocation9 + $0x8] sm:$0xff] (!%p2250_p3)  ;;  %v1367_v7 = vld [vmem:[#allocation9 + $0x18] sm:$0xff] (!%p2250_p3) }
 0x2d0   : > { %v2615_v6 = vpack.c.bf16 (!%p2250_p3), %v1365_v3, %v1364_v2  ;;  %v1368_v9 = vld [vmem:[#allocation9 + $0x20] sm:$0xff] (!%p2250_p3)  ;;  %v1725_v2 = vld [vmem:[#allocation14 + $0x50] sm:$0xff] (!%p2250_p3) }
 0x2d1   : > { %v1223_v10 = vadd.f32 %v1157_v8, %v549_v5  ;;  %v936_v11 = vpop.f32.mrb[48].mxu0  ;;  %v1366_v5 = vld [vmem:[#allocation9 + $0x10] sm:$0xff] (!%p2250_p3)  ;;  %v1726_v3 = vld [vmem:[#allocation14 + $0x58] sm:$0xff] (!%p2250_p3) }
 0x2d2   : > { %v1161_v13 = vpop.f32.mrb[48].mxu1  ;;  %v938_v14 = vpop.f32.mrb[49].mxu0  ;;  %v2619_v8 = vpack.c.bf16 (!%p2250_p3), %v1367_v7, %v1366_v5  ;;  %2616 = vmatprep.subr.bf16.mxu0 (!%p2250_p3), %v2615_v6  ;;  %v1277_v7 = vld [vmem:[#allocation2 + $0x48] sm:$0xff] (!%p2250_p3) }
 0x2d3   : > { %1255 = vst [vmem:[#allocation2 + $0xb8] sm:$0xff] %v1223_v10  ;;  %v1162_v15 = vadd.f32 %v1161_v13, %v936_v11  ;;  %v1163_v16 = vpop.f32.mrb[49].mxu1  ;;  %v1369_v10 = vld [vmem:[#allocation9 + $0x28] sm:$0xff] (!%p2250_p3)  ;;  %2618 = vmatpush3.bf16.msra.mxu0 (!%p2250_p3), %v2615_v6  ;;  %v1300_v13 = vld [vmem:[%s3781_s3] sm:$0xff] (!%p2250_p3)  ;;  %v1370_v14 = vld [vmem:[#allocation9 + $0x30] sm:$0xff] (!%p2250_p3) }
 0x2d4   : > { %2620 = vmatprep.subr.bf16.mxu0 (!%p2250_p3), %v2619_v8  ;;  %v2623_v11 = vpack.c.bf16 (!%p2250_p3), %v1369_v10, %v1368_v9  ;;  %v2667_v9 = vpack.c.bf16 (!%p2250_p3), %v1726_v3, %v1725_v2  ;;  %v1278_v10 = vld [vmem:[#allocation2 + $0x50] sm:$0xff] (!%p2250_p3) }
 0x2d5   : > { %v1224_v17 = vadd.f32 %v1162_v15, %v550_v12  ;;  %v941_v18 = vpop.f32.mrb[50].mxu0  ;;  %v1268_v12 = vld [vmem:[#allocation2] sm:$0xff] (!%p2250_p3)  ;;  %v1371_v15 = vld [vmem:[#allocation9 + $0x38] sm:$0xff] (!%p2250_p3) }
 0x2d6   : > { %v1166_v20 = vpop.f32.mrb[50].mxu1  ;;  %v943_v21 = vpop.f32.mrb[51].mxu0  ;;  %v1332_v16 = vadd.f32 (!%p2250_p3), %v1300_v13, %v1268_v12 }
 0x2d7   : > { %1256 = vst [vmem:[#allocation2 + $0xc0] sm:$0xff] %v1224_v17  ;;  %v1167_v22 = vadd.f32 %v1166_v20, %v941_v18  ;;  %v1168_v23 = vpop.f32.mrb[51].mxu1  ;;  %2622 = vmatpush3.bf16.msra.mxu0 (!%p2250_p3), %v2619_v8  ;;  %v2627_v17 = vpack.c.bf16 (!%p2250_p3), %v1371_v15, %v1370_v14  ;;  %v1372_v18 = vld [vmem:[#allocation9 + $0x40] sm:$0xff] (!%p2250_p3)  ;;  %v1374_v21 = vld [vmem:[#allocation9 + $0x50] sm:$0xff] (!%p2250_p3)  ;;  %v1309_v8 = vld [vmem:[%s3781_s3 + $0x48] sm:$0xff] (!%p2250_p3) }
 0x2d8   : > { %2391 = vmatprep.mubr.f32.mxu0 (!%p2250_p3), %v1332_v16  ;;  %2624 = vmatprep.subr.bf16.mxu0 (!%p2250_p3), %v2623_v11  ;;  %v1341_v12 = vadd.f32 (!%p2250_p3), %v1309_v8, %v1277_v7  ;;  %v1279_v14 = vld [vmem:[#allocation2 + $0x58] sm:$0xff] (!%p2250_p3)  ;;  %v1280_v16 = vld [vmem:[#allocation2 + $0x60] sm:$0xff] (!%p2250_p3)  ;;  %v1330_v7 = vld [vmem:[%s3781_s3 + $0xf0] sm:$0xff] (!%p2250_p3) }
 0x2d9   : > { %v1225_v24 = vadd.f32 %v1167_v22, %v551_v19  ;;  %v946_v25 = vpop.f32.mrb[52].mxu0  ;;  %v1373_v19 = vld [vmem:[#allocation9 + $0x48] sm:$0xff] (!%p2250_p3)  ;;  %v1375_v22 = vld [vmem:[#allocation9 + $0x58] sm:$0xff] (!%p2250_p3) }
 0x2da   : > { %v1171_v27 = vpop.f32.mrb[52].mxu1  ;;  %v948_v28 = vpop.f32.mrb[53].mxu0  ;;  %v2631_v20 = vpack.c.bf16 (!%p2250_p3), %v1373_v19, %v1372_v18  ;;  %v2635_v23 = vpack.c.bf16 (!%p2250_p3), %v1375_v22, %v1374_v21  ;;  %v1311_v15 = vld [vmem:[%s3781_s3 + $0x58] sm:$0xff] (!%p2250_p3)  ;;  %v1313_v21 = vld [vmem:[%s3781_s3 + $0x68] sm:$0xff] (!%p2250_p3)  ;;  %v1282_v22 = vld [vmem:[#allocation2 + $0x70] sm:$0xff] (!%p2250_p3) }
 0x2db   : > { %1257 = vst [vmem:[#allocation2 + $0xc8] sm:$0xff] %v1225_v24  ;;  %v1172_v29 = vadd.f32 %v1171_v27, %v946_v25  ;;  %v1173_v30 = vpop.f32.mrb[53].mxu1  ;;  %2626 = vmatpush3.bf16.msra.mxu0 (!%p2250_p3), %v2623_v11  ;;  %v1376_v24 = vld [vmem:[#allocation9 + $0x60] sm:$0xff] (!%p2250_p3)  ;;  %v1377_v25 = vld [vmem:[#allocation9 + $0x68] sm:$0xff] (!%p2250_p3)  ;;  %v1378_v27 = vld [vmem:[#allocation9 + $0x70] sm:$0xff] (!%p2250_p3)  ;;  %v1343_v18 = vadd.f32 (!%p2250_p3), %v1311_v15, %v1279_v14 }
 0x2dc   : > { %2628 = vmatprep.subr.bf16.mxu0 (!%p2250_p3), %v2627_v17  ;;  %v1379_v28 = vld [vmem:[#allocation9 + $0x78] sm:$0xff] (!%p2250_p3)  ;;  %v1715_v30 = vld [vmem:[#allocation14] sm:$0xff] (!%p2250_p3)  ;;  %v1310_v11 = vld [vmem:[%s3781_s3 + $0x50] sm:$0xff] (!%p2250_p3) }
 0x2dd   : > { %v1226_v31 = vadd.f32 %v1172_v29, %v552_v26  ;;  %v951_v32 = vpop.f32.mrb[54].mxu0  ;;  %v2639_v26 = vpack.c.bf16 (!%p2250_p3), %v1377_v25, %v1376_v24  ;;  %v2643_v29 = vpack.c.bf16 (!%p2250_p3), %v1379_v28, %v1378_v27  ;;  %v1342_v13 = vadd.f32 (!%p2250_p3), %v1310_v11, %v1278_v10  ;;  %v1315_v27 = vld [vmem:[%s3781_s3 + $0x78] sm:$0xff] (!%p2250_p3)  ;;  %v1284_v28 = vld [vmem:[#allocation2 + $0x80] sm:$0xff] (!%p2250_p3)  ;;  %v1728_v14 = vld [vmem:[#allocation14 + $0x68] sm:$0xff] (!%p2250_p3) }
 0x2de   : > { %v1176_v34 = vpop.f32.mrb[54].mxu1  ;;  %v953_v35 = vpop.f32.mrb[55].mxu0  ;;  %v1331_v11 = vld [vmem:[%s3781_s3 + $0xf8] sm:$0xff] (!%p2250_p3) }
 0x2df   : > { %1258 = vst [vmem:[#allocation2 + $0xd0] sm:$0xff] %v1226_v31  ;;  %v1177_v36 = vadd.f32 %v1176_v34, %v951_v32  ;;  %v1178_v37 = vpop.f32.mrb[55].mxu1  ;;  %2630 = vmatpush3.bf16.msra.mxu0 (!%p2250_p3), %v2627_v17  ;;  %v1716_v31 = vld [vmem:[#allocation14 + $0x8] sm:$0xff] (!%p2250_p3)  ;;  %v1717_v32 = vld [vmem:[#allocation14 + $0x10] sm:$0xff] (!%p2250_p3)  ;;  %v1312_v17 = vld [vmem:[%s3781_s3 + $0x60] sm:$0xff] (!%p2250_p3) }
 0x2e0   : > { %2632 = vmatprep.subr.bf16.mxu0 (!%p2250_p3), %v2631_v20  ;;  %v1269_v34 = vld [vmem:[#allocation2 + $0x8] sm:$0xff] (!%p2250_p3)  ;;  %v2647_v37 = vpack.c.bf16 (!%p2250_p3), %v1716_v31, %v1715_v30  ;;  %v1344_v19 = vadd.f32 (!%p2250_p3), %v1312_v17, %v1280_v16  ;;  %v1729_v16 = vld [vmem:[#allocation14 + $0x70] sm:$0xff] (!%p2250_p3)  ;;  %v1730_v17 = vld [vmem:[#allocation14 + $0x78] sm:$0xff] (!%p2250_p3) }
 0x2e1   : > { %v1227_v38 = vadd.f32 %v1177_v36, %v553_v33  ;;  %v956_v39 = vpop.f32.mrb[56].mxu0  ;;  %v1718_v33 = vld [vmem:[#allocation14 + $0x18] sm:$0xff] (!%p2250_p3)  ;;  %v1301_v35 = vld [vmem:[%s3781_s3 + $0x8] sm:$0xff] (!%p2250_p3)  ;;  %v1270_v36 = vld [vmem:[#allocation2 + $0x10] sm:$0xff] (!%p2250_p3) }
 0x2e2   : > { %v1181_v41 = vpop.f32.mrb[56].mxu1  ;;  %v958_v42 = vpop.f32.mrb[57].mxu0  ;;  %2648 = vmatprep.subr.bf16.mxu1 (!%p2250_p3), %v2647_v37 }
 0x2e3   : > { %1259 = vst [vmem:[#allocation2 + $0xd8] sm:$0xff] %v1227_v38  ;;  %v1182_v43 = vadd.f32 %v1181_v41, %v956_v39  ;;  %v1183_v4 = vpop.f32.mrb[57].mxu1  ;;  %2634 = vmatpush3.bf16.msra.mxu0 (!%p2250_p3), %v2631_v20  ;;  %v2651_v38 = vpack.c.bf16 (!%p2250_p3), %v1718_v33, %v1717_v32  ;;  %v1302_v39 = vld [vmem:[%s3781_s3 + $0x10] sm:$0xff] (!%p2250_p3)  ;;  %v1333_v42 = vadd.f32 (!%p2250_p3), %v1301_v35, %v1269_v34  ;;  %v1281_v20 = vld [vmem:[#allocation2 + $0x68] sm:$0xff] (!%p2250_p3) }
 0x2e4   : > { %2636 = vmatprep.subr.bf16.mxu0 (!%p2250_p3), %v2635_v23  ;;  %v1720_v41 = vld [vmem:[#allocation14 + $0x28] sm:$0xff] (!%p2250_p3)  ;;  %2650 = vmatpush3.bf16.msra.mxu1 (!%p2250_p3), %v2647_v37  ;;  %v1271_v4 = vld [vmem:[#allocation2 + $0x18] sm:$0xff] (!%p2250_p3)  ;;  %v1345_v24 = vadd.f32 (!%p2250_p3), %v1313_v21, %v1281_v20  ;;  %v4061_v21 = vld [vmem:[#allocation12] ss:$0 sm:$0xff] (!%p2250_p3) }
 0x2e5   : > { %v1228_v44 = vadd.f32 %v1182_v43, %v554_v40  ;;  %v961_v45 = vpop.f32.mrb[58].mxu0  ;;  %v1719_v40 = vld [vmem:[#allocation14 + $0x20] sm:$0xff] (!%p2250_p3)  ;;  %v1334_v43 = vadd.f32 (!%p2250_p3), %v1302_v39, %v1270_v36  ;;  %2652 = vmatprep.subr.bf16.mxu1 (!%p2250_p3), %v2651_v38  ;;  %v1286_v34 = vld [vmem:[#allocation2 + $0x90] sm:$0xff] (!%p2250_p3)  ;;  %v1319_v39 = vld [vmem:[%s3781_s3 + $0x98] sm:$0xff] (!%p2250_p3) }
 0x2e6   : > { %v1186_v47 = vpop.f32.mrb[58].mxu1  ;;  %v963_v48 = vpop.f32.mrb[59].mxu0  ;;  %v1285_v32 = vld [vmem:[#allocation2 + $0x88] sm:$0xff] (!%p2250_p3)  ;;  %v1318_v35 = vld [vmem:[%s3781_s3 + $0x90] sm:$0xff] (!%p2250_p3) }
 0x2e7   : > { %1260 = vst [vmem:[#allocation2 + $0xe0] sm:$0xff] %v1228_v44  ;;  %v1187_v49 = vadd.f32 %v1186_v47, %v961_v45  ;;  %v1188_v50 = vpop.f32.mrb[59].mxu1  ;;  %2638 = vmatpush3.bf16.msra.mxu0 (!%p2250_p3), %v2635_v23  ;;  %v1303_v44 = vld [vmem:[%s3781_s3 + $0x18] sm:$0xff] (!%p2250_p3)  ;;  %v1272_v45 = vld [vmem:[#allocation2 + $0x20] sm:$0xff] (!%p2250_p3)  ;;  %v1314_v23 = vld [vmem:[%s3781_s3 + $0x70] sm:$0xff] (!%p2250_p3)  ;;  %v1350_v37 = vadd.f32 (!%p2250_p3), %v1318_v35, %v1286_v34 }
 0x2e8   : > { %2640 = vmatprep.subr.bf16.mxu0 (!%p2250_p3), %v2639_v26  ;;  %v1304_v47 = vld [vmem:[%s3781_s3 + $0x20] sm:$0xff] (!%p2250_p3)  ;;  %v1721_v48 = vld [vmem:[#allocation14 + $0x30] sm:$0xff] (!%p2250_p3)  ;;  %v1335_v50 = vadd.f32 (!%p2250_p3), %v1303_v44, %v1271_v4  ;;  %2654 = vmatpush3.bf16.msra.mxu1 (!%p2250_p3), %v2651_v38  ;;  %v1346_v25 = vadd.f32 (!%p2250_p3), %v1314_v23, %v1282_v22  ;;  %v1317_v33 = vld [vmem:[%s3781_s3 + $0x88] sm:$0xff] (!%p2250_p3) }
 0x2e9   : > { %v1229_v51 = vadd.f32 %v1187_v49, %v555_v46  ;;  %v966_v52 = vpop.f32.mrb[60].mxu0  ;;  %v2655_v46 = vpack.c.bf16 (!%p2250_p3), %v1720_v41, %v1719_v40  ;;  %v1722_v49 = vld [vmem:[#allocation14 + $0x38] sm:$0xff] (!%p2250_p3)  ;;  %v1349_v36 = vadd.f32 (!%p2250_p3), %v1317_v33, %v1285_v32  ;;  %v1289_v4 = vld [vmem:[#allocation2 + $0xa8] sm:$0xff] (!%p2250_p3) }
 0x2ea   : > { %v1191_v54 = vpop.f32.mrb[60].mxu1  ;;  %v968_v55 = vpop.f32.mrb[61].mxu0  ;;  %v1287_v38 = vld [vmem:[#allocation2 + $0x98] sm:$0xff] (!%p2250_p3)  ;;  %v1288_v40 = vld [vmem:[#allocation2 + $0xa0] sm:$0xff] (!%p2250_p3)  ;;  %v1321_v44 = vld [vmem:[%s3781_s3 + $0xa8] sm:$0xff] (!%p2250_p3) }
 0x2eb   : > { %1261 = vst [vmem:[#allocation2 + $0xe8] sm:$0xff] %v1229_v51  ;;  %v1192_v56 = vadd.f32 %v1191_v54, %v966_v52  ;;  %v1193_v57 = vpop.f32.mrb[61].mxu1  ;;  %2642 = vmatpush3.bf16.msra.mxu0 (!%p2250_p3), %v2639_v26  ;;  %v1336_v51 = vadd.f32 (!%p2250_p3), %v1304_v47, %v1272_v45  ;;  %v1273_v52 = vld [vmem:[#allocation2 + $0x28] sm:$0xff] (!%p2250_p3)  ;;  %v1274_v54 = vld [vmem:[#allocation2 + $0x30] sm:$0xff] (!%p2250_p3)  ;;  %2656 = vmatprep.subr.bf16.mxu1 (!%p2250_p3), %v2655_v46  ;;  %v1283_v26 = vld [vmem:[#allocation2 + $0x78] sm:$0xff] (!%p2250_p3) }
 0x2ec   : > { %2644 = vmatprep.subr.bf16.mxu0 (!%p2250_p3), %v2643_v29  ;;  %v2659_v55 = vpack.c.bf16 (!%p2250_p3), %v1722_v49, %v1721_v48  ;;  %v1723_v57 = vld [vmem:[#allocation14 + $0x40] sm:$0xff] (!%p2250_p3)  ;;  %2658 = vmatpush3.bf16.msra.mxu1 (!%p2250_p3), %v2655_v46  ;;  %v1347_v30 = vadd.f32 (!%p2250_p3), %v1315_v27, %v1283_v26  ;;  %v1290_v45 = vld [vmem:[#allocation2 + $0xb0] sm:$0xff] (!%p2250_p3)  ;;  %v1353_v47 = vadd.f32 (!%p2250_p3), %v1321_v44, %v1289_v4  ;;  %v1291_v49 = vld [vmem:[#allocation2 + $0xb8] sm:$0xff] (!%p2250_p3) }
 0x2ed   : > { %v1230_v58 = vadd.f32 %v1192_v56, %v556_v53  ;;  %v971_v59 = vpop.f32.mrb[62].mxu0  ;;  %1267 = sbr.rel (%p2250_p3) target bundleno = 1252 (0x4e4), region = 92  ;;  %v1305_v53 = vld [vmem:[%s3781_s3 + $0x28] sm:$0xff] (!%p2250_p3)  ;;  %v1306_v56 = vld [vmem:[%s3781_s3 + $0x30] sm:$0xff] (!%p2250_p3)  ;;  %v1320_v41 = vld [vmem:[%s3781_s3 + $0xa0] sm:$0xff] (!%p2250_p3) }
 0x2ee   : > { %v1196_v61 = vpop.f32.mrb[62].mxu1  ;;  %v973_v62 = vpop.f32.mrb[63].mxu0  ;;  %2660 = vmatprep.subr.bf16.mxu1 (!%p2250_p3), %v2659_v55  ;;  %v1322_v46 = vld [vmem:[%s3781_s3 + $0xb0] sm:$0xff] (!%p2250_p3) }
 0x2ef   : > { %1262 = vst [vmem:[#allocation2 + $0xf0] sm:$0xff] %v1230_v58  ;;  %v1197_v63 = vadd.f32 %v1196_v61, %v971_v59  ;;  %v1198_v0 = vpop.f32.mrb[63].mxu1  ;;  %2646 = vmatpush3.bf16.msra.mxu0 (!%p2250_p3), %v2643_v29  ;;  %v1724_v58 = vld [vmem:[#allocation14 + $0x48] sm:$0xff] (!%p2250_p3)  ;;  %v1337_v59 = vadd.f32 (!%p2250_p3), %v1305_v53, %v1273_v52  ;;  %v1275_v61 = vld [vmem:[#allocation2 + $0x38] sm:$0xff] (!%p2250_p3)  ;;  %v1316_v29 = vld [vmem:[%s3781_s3 + $0x80] sm:$0xff] (!%p2250_p3)  ;;  %v1354_v48 = vadd.f32 (!%p2250_p3), %v1322_v46, %v1290_v45 }
 0x2f0   : > { %v1307_v62 = vld [vmem:[%s3781_s3 + $0x38] sm:$0xff] (!%p2250_p3)  ;;  %v2663_v0 = vpack.c.bf16 (!%p2250_p3), %v1724_v58, %v1723_v57  ;;  %2662 = vmatpush3.bf16.msra.mxu1 (!%p2250_p3), %v2659_v55  ;;  %v1348_v31 = vadd.f32 (!%p2250_p3), %v1316_v29, %v1284_v28  ;;  %v1324_v52 = vld [vmem:[%s3781_s3 + $0xc0] sm:$0xff] (!%p2250_p3)  ;;  %v1293_v55 = vld [vmem:[#allocation2 + $0xc8] sm:$0xff] (!%p2250_p3) }
 0x2f1   : > { %v1231_v1 = vadd.f32 %v1197_v63, %v557_v60  ;;  %v1338_v60 = vadd.f32 (!%p2250_p3), %v1306_v56, %v1274_v54  ;;  %v1276_v63 = vld [vmem:[#allocation2 + $0x40] sm:$0xff] (!%p2250_p3)  ;;  %v1339_v5 = vadd.f32 (!%p2250_p3), %v1307_v62, %v1275_v61  ;;  %v1325_v56 = vld [vmem:[%s3781_s3 + $0xc8] sm:$0xff] (!%p2250_p3)  ;;  %v1294_v57 = vld [vmem:[#allocation2 + $0xd0] sm:$0xff] (!%p2250_p3) }
 0x2f2   : > { %2392 = vmatmul.mubr.f32.vlgmr.msra.gmra.mrb[0].mxu0 (!%p2250_p3), %v1333_v42  ;;  %2664 = vmatprep.subr.bf16.mxu1 (!%p2250_p3), %v2663_v0  ;;  %v1351_v42 = vadd.f32 (!%p2250_p3), %v1319_v39, %v1287_v38  ;;  %v1326_v58 = vld [vmem:[%s3781_s3 + $0xd0] sm:$0xff] (!%p2250_p3)  ;;  %v1295_v61 = vld [vmem:[#allocation2 + $0xd8] sm:$0xff] (!%p2250_p3)  ;;  %v1297_v3 = vld [vmem:[#allocation2 + $0xe8] sm:$0xff] (!%p2250_p3) }
 0x2f3   : > { %1263 = vst [vmem:[#allocation2 + $0xf8] sm:$0xff] %v1231_v1  ;;  %2394 = vmatprep.mubr.f32.mxu0 (!%p2250_p3), %v1334_v43  ;;  %v1308_v1 = vld [vmem:[%s3781_s3 + $0x40] sm:$0xff] (!%p2250_p3)  ;;  %v1352_v43 = vadd.f32 (!%p2250_p3), %v1320_v41, %v1288_v40  ;;  %v1327_v62 = vld [vmem:[%s3781_s3 + $0xd8] sm:$0xff] (!%p2250_p3) }
 0x2f4   : > { %v1340_v6 = vadd.f32 %v1308_v1, %v1276_v63  ;;  %2666 = vmatpush3.bf16.msra.mxu1 %v2663_v0  ;;  %v1296_v63 = vld [vmem:[#allocation2 + $0xe0] sm:$0xff]  ;;  %v1359_v1 = vadd.f32 %v1327_v62, %v1295_v61 }
 0x2f5   : > { %2668 = vmatprep.subr.bf16.mxu1 %v2667_v9  ;;  %v1328_v0 = vld [vmem:[%s3781_s3 + $0xe0] sm:$0xff] }
 0x2f6   : > { %2395 = vmatmul.mubr.f32.gmra.mrb[2].mxu0 %v1335_v50  ;;  %v1323_v50 = vld [vmem:[%s3781_s3 + $0xb8] sm:$0xff]  ;;  %v1360_v2 = vadd.f32 %v1328_v0, %v1296_v63 }
 0x2f7   : > { %2397 = vmatprep.mubr.f32.mxu0 %v1336_v51  ;;  %v1292_v51 = vld [vmem:[#allocation2 + $0xc0] sm:$0xff]  ;;  %v1355_v53 = vadd.f32 %v1323_v50, %v1291_v49 }
 0x2f8   : > { %2670 = vmatpush3.bf16.msra.mxu1 %v2667_v9  ;;  %v1356_v54 = vadd.f32 %v1324_v52, %v1292_v51 }
 0x2fa   : > { %2398 = vmatmul.mubr.f32.gmra.mrb[4].mxu0 %v1337_v59  ;;  %v1357_v59 = vadd.f32 %v1325_v56, %v1293_v55  ;;  %v1299_v10 = vld [vmem:[#allocation2 + $0xf8] sm:$0xff] }
 0x2fb   : > { %2400 = vmatprep.mubr.f32.mxu0 %v1338_v60  ;;  %v1358_v60 = vadd.f32 %v1326_v58, %v1294_v57 }
 0x2fe   : > { %2401 = vmatmul.mubr.f32.gmra.mrb[6].mxu0 %v1339_v5  ;;  %v1329_v5 = vld [vmem:[%s3781_s3 + $0xe8] sm:$0xff] }
 0x2ff   : > { %2403 = vmatprep.mubr.f32.mxu0 %v1340_v6  ;;  %v1298_v6 = vld [vmem:[#allocation2 + $0xf0] sm:$0xff]  ;;  %v1361_v8 = vadd.f32 %v1329_v5, %v1297_v3 }
 0x300   : > { %v1362_v9 = vadd.f32 %v1330_v7, %v1298_v6 }
 0x302   : > { %2404 = vmatmul.mubr.f32.gmra.mrb[8].mxu0 %v1341_v12  ;;  %v1363_v12 = vadd.f32 %v1331_v11, %v1299_v10 }
 0x303   : > { %2406 = vmatprep.mubr.f32.mxu0 %v1342_v13  ;;  %v1727_v13 = vld [vmem:[#allocation14 + $0x60] sm:$0xff] }
 0x304   : > { %v2671_v15 = vpack.c.bf16 %v1728_v14, %v1727_v13 }
 0x306   : > { %2407 = vmatmul.mubr.f32.gmra.mrb[10].mxu0 %v1343_v18  ;;  %2672 = vmatprep.subr.bf16.mxu1 %v2671_v15  ;;  %v2675_v18 = vpack.c.bf16 %v1730_v17, %v1729_v16 }
 0x307   : > { %2409 = vmatprep.mubr.f32.mxu0 %v1344_v19  ;;  %2674 = vmatpush3.bf16.msra.mxu1 %v2671_v15  ;;  %v4059_v19 = vld [vmem:[#allocation11] ss:$0 sm:$0xff] }
 0x308   : > { %2676 = vmatprep.subr.bf16.mxu1 %v2675_v18 }
 0x30a   : > { %2410 = vmatmul.mubr.f32.gmra.mrb[12].mxu0 %v1345_v24 }
 0x30b   : > { %2412 = vmatprep.mubr.f32.mxu0 %v1346_v25  ;;  %2678 = vmatpush3.bf16.msra.mxu1 %v2675_v18 }
 0x30e   : > { %2413 = vmatmul.mubr.f32.gmra.mrb[14].mxu0 %v1347_v30 }
 0x30f   : > { %2415 = vmatprep.mubr.f32.mxu0 %v1348_v31 }
 0x312   : > { %2416 = vmatmul.mubr.f32.gmra.mrb[16].mxu0 %v1349_v36 }
 0x313   : > { %2418 = vmatprep.mubr.f32.mxu0 %v1350_v37 }
 0x316   : > { %2419 = vmatmul.mubr.f32.gmra.mrb[18].mxu0 %v1351_v42 }
 0x317   : > { %2421 = vmatprep.mubr.f32.mxu0 %v1352_v43 }
 0x31a   : > { %2422 = vmatmul.mubr.f32.gmra.mrb[20].mxu0 %v1353_v47 }
 0x31b   : > { %2424 = vmatprep.mubr.f32.mxu0 %v1354_v48 }
 0x31e   : > { %2425 = vmatmul.mubr.f32.gmra.mrb[22].mxu0 %v1355_v53 }
 0x31f   : > { %2427 = vmatprep.mubr.f32.mxu0 %v1356_v54 }
 0x322   : > { %2428 = vmatmul.mubr.f32.gmra.mrb[24].mxu0 %v1357_v59 }
 0x323   : > { %2430 = vmatprep.mubr.f32.mxu0 %v1358_v60 }
 0x326   : > { %2431 = vmatmul.mubr.f32.gmra.mrb[26].mxu0 %v1359_v1 }
 0x327   : > { %2433 = vmatprep.mubr.f32.mxu0 %v1360_v2 }
 0x32a   : > { %2434 = vmatmul.mubr.f32.gmra.mrb[28].mxu0 %v1361_v8 }
 0x32b   : > { %2436 = vmatprep.mubr.f32.mxu0 %v1362_v9 }
 0x32e   : > { %2437 = vmatmul.mubr.f32.gmra.mrb[30].mxu0 %v1363_v12 }
 0x3c5   : > { %v2393_v20 = vpop.f32.mrb[0].mxu0 }
 0x3c6   : > { %v1613_v22 = vmul.f32 %v2393_v20, %v4059_v19  ;;  %v1446_v23 = vpop.f32.mrb[1].mxu0 }
 0x3c7   : > { %v1612_v24 = vmul.f32 %v4059_v19, %v1446_v23 }
 0x3c8   : > { %v1652_v25 = vadd.f32 %v4061_v21, %v1613_v22 }
 0x3c9   : > { %v2396_v26 = vpop.f32.mrb[2].mxu0  ;;  %v1651_v27 = vadd.f32 %v4061_v21, %v1612_v24 }
 0x3ca   : > { %v1615_v28 = vmul.f32 %v2396_v26, %v4059_v19  ;;  %v1456_v29 = vpop.f32.mrb[3].mxu0  ;;  %v1684_v32 = vmax.f32 %v1652_v25, 0.0 }
 0x3cb   : > { %v1614_v30 = vmul.f32 %v4059_v19, %v1456_v29  ;;  %v1683_v31 = vmax.f32 %v1651_v27, 0.0 }
 0x3cc   : > { %v1654_v33 = vadd.f32 %v4061_v21, %v1615_v28 }
 0x3cd   : > { %v1653_v34 = vadd.f32 %v4061_v21, %v1614_v30  ;;  %v2399_v35 = vpop.f32.mrb[4].mxu0  ;;  %2471 = vmatprep.mubr.f32.mxu1 %v1683_v31 }
 0x3ce   : > { %v1617_v36 = vmul.f32 %v2399_v35, %v4059_v19  ;;  %v1466_v37 = vpop.f32.mrb[5].mxu0  ;;  %2472 = vmatmul.mubr.f32.vlgmr.msra.gmra.mrb[0].mxu1 %v1684_v32  ;;  %v1686_v40 = vmax.f32 %v1654_v33, 0.0 }
 0x3cf   : > { %v1685_v38 = vmax.f32 %v1653_v34, 0.0  ;;  %v1616_v39 = vmul.f32 %v4059_v19, %v1466_v37 }
 0x3d0   : > { %v1656_v41 = vadd.f32 %v4061_v21, %v1617_v36 }
 0x3d1   : > { %v1655_v42 = vadd.f32 %v4061_v21, %v1616_v39  ;;  %v2402_v43 = vpop.f32.mrb[6].mxu0  ;;  %2474 = vmatprep.mubr.f32.mxu1 %v1685_v38 }
 0x3d2   : > { %v1619_v4 = vmul.f32 %v2402_v43, %v4059_v19  ;;  %v1476_v44 = vpop.f32.mrb[7].mxu0  ;;  %2475 = vmatmul.mubr.f32.gmra.mrb[2].mxu1 %v1686_v40  ;;  %v1688_v47 = vmax.f32 %v1656_v41, 0.0 }
 0x3d3   : > { %v1687_v45 = vmax.f32 %v1655_v42, 0.0  ;;  %v1618_v46 = vmul.f32 %v4059_v19, %v1476_v44 }
 0x3d4   : > { %v1658_v48 = vadd.f32 %v4061_v21, %v1619_v4 }
 0x3d5   : > { %v1657_v49 = vadd.f32 %v4061_v21, %v1618_v46  ;;  %v2405_v50 = vpop.f32.mrb[8].mxu0  ;;  %2477 = vmatprep.mubr.f32.mxu1 %v1687_v45 }
 0x3d6   : > { %v1621_v51 = vmul.f32 %v2405_v50, %v4059_v19  ;;  %v1486_v52 = vpop.f32.mrb[9].mxu0  ;;  %2478 = vmatmul.mubr.f32.gmra.mrb[4].mxu1 %v1688_v47  ;;  %v1690_v55 = vmax.f32 %v1658_v48, 0.0 }
 0x3d7   : > { %v1689_v53 = vmax.f32 %v1657_v49, 0.0  ;;  %v1620_v54 = vmul.f32 %v4059_v19, %v1486_v52 }
 0x3d8   : > { %v1660_v56 = vadd.f32 %v4061_v21, %v1621_v51 }
 0x3d9   : > { %v1659_v57 = vadd.f32 %v4061_v21, %v1620_v54  ;;  %v2408_v58 = vpop.f32.mrb[10].mxu0  ;;  %2480 = vmatprep.mubr.f32.mxu1 %v1689_v53 }
 0x3da   : > { %v1623_v59 = vmul.f32 %v2408_v58, %v4059_v19  ;;  %v1496_v60 = vpop.f32.mrb[11].mxu0  ;;  %2481 = vmatmul.mubr.f32.gmra.mrb[6].mxu1 %v1690_v55  ;;  %v1692_v63 = vmax.f32 %v1660_v56, 0.0 }
 0x3db   : > { %v1691_v61 = vmax.f32 %v1659_v57, 0.0  ;;  %v1622_v62 = vmul.f32 %v4059_v19, %v1496_v60 }
 0x3dc   : > { %v1662_v0 = vadd.f32 %v4061_v21, %v1623_v59 }
 0x3dd   : > { %v1661_v1 = vadd.f32 %v4061_v21, %v1622_v62  ;;  %v2411_v2 = vpop.f32.mrb[12].mxu0  ;;  %2483 = vmatprep.mubr.f32.mxu1 %v1691_v61 }
 0x3de   : > { %v1625_v3 = vmul.f32 %v2411_v2, %v4059_v19  ;;  %v1506_v5 = vpop.f32.mrb[13].mxu0  ;;  %2484 = vmatmul.mubr.f32.gmra.mrb[8].mxu1 %v1692_v63  ;;  %v1694_v8 = vmax.f32 %v1662_v0, 0.0 }
 0x3df   : > { %v1693_v6 = vmax.f32 %v1661_v1, 0.0  ;;  %v1624_v7 = vmul.f32 %v4059_v19, %v1506_v5 }
 0x3e0   : > { %v1664_v9 = vadd.f32 %v4061_v21, %v1625_v3 }
 0x3e1   : > { %v1663_v10 = vadd.f32 %v4061_v21, %v1624_v7  ;;  %v2414_v11 = vpop.f32.mrb[14].mxu0  ;;  %2486 = vmatprep.mubr.f32.mxu1 %v1693_v6 }
 0x3e2   : > { %v1627_v12 = vmul.f32 %v2414_v11, %v4059_v19  ;;  %v1516_v13 = vpop.f32.mrb[15].mxu0  ;;  %2487 = vmatmul.mubr.f32.gmra.mrb[10].mxu1 %v1694_v8  ;;  %v1696_v16 = vmax.f32 %v1664_v9, 0.0 }
 0x3e3   : > { %v1695_v14 = vmax.f32 %v1663_v10, 0.0  ;;  %v1626_v15 = vmul.f32 %v4059_v19, %v1516_v13 }
 0x3e4   : > { %v1666_v17 = vadd.f32 %v4061_v21, %v1627_v12 }
 0x3e5   : > { %v1665_v18 = vadd.f32 %v4061_v21, %v1626_v15  ;;  %v2417_v20 = vpop.f32.mrb[16].mxu0  ;;  %2489 = vmatprep.mubr.f32.mxu1 %v1695_v14 }
 0x3e6   : > { %v1629_v22 = vmul.f32 %v2417_v20, %v4059_v19  ;;  %v1526_v23 = vpop.f32.mrb[17].mxu0  ;;  %2490 = vmatmul.mubr.f32.gmra.mrb[12].mxu1 %v1696_v16  ;;  %v1698_v26 = vmax.f32 %v1666_v17, 0.0 }
 0x3e7   : > { %v1697_v24 = vmax.f32 %v1665_v18, 0.0  ;;  %v1628_v25 = vmul.f32 %v4059_v19, %v1526_v23 }
 0x3e8   : > { %v1668_v27 = vadd.f32 %v4061_v21, %v1629_v22 }
 0x3e9   : > { %v1667_v28 = vadd.f32 %v4061_v21, %v1628_v25  ;;  %v2420_v29 = vpop.f32.mrb[18].mxu0  ;;  %2492 = vmatprep.mubr.f32.mxu1 %v1697_v24  ;;  %v4127_v25 = vld [vmem:[#allocation15] ss:$0 sm:$0xff] }
 0x3ea   : > { %v1631_v30 = vmul.f32 %v2420_v29, %v4059_v19  ;;  %v1536_v31 = vpop.f32.mrb[19].mxu0  ;;  %2493 = vmatmul.mubr.f32.gmra.mrb[14].mxu1 %v1698_v26  ;;  %v1700_v34 = vmax.f32 %v1668_v27, 0.0 }
 0x3eb   : > { %v1699_v32 = vmax.f32 %v1667_v28, 0.0  ;;  %v1630_v33 = vmul.f32 %v4059_v19, %v1536_v31 }
 0x3ec   : > { %v1670_v35 = vadd.f32 %v4061_v21, %v1631_v30 }
 0x3ed   : > { %v1669_v36 = vadd.f32 %v4061_v21, %v1630_v33  ;;  %v2423_v37 = vpop.f32.mrb[20].mxu0  ;;  %2495 = vmatprep.mubr.f32.mxu1 %v1699_v32 }
 0x3ee   : > { %v1633_v38 = vmul.f32 %v2423_v37, %v4059_v19  ;;  %v1546_v39 = vpop.f32.mrb[21].mxu0  ;;  %2496 = vmatmul.mubr.f32.gmra.mrb[16].mxu1 %v1700_v34  ;;  %v1702_v42 = vmax.f32 %v1670_v35, 0.0 }
 0x3ef   : > { %v1701_v40 = vmax.f32 %v1669_v36, 0.0  ;;  %v1632_v41 = vmul.f32 %v4059_v19, %v1546_v39 }
 0x3f0   : > { %v1672_v43 = vadd.f32 %v4061_v21, %v1633_v38 }
 0x3f1   : > { %v1671_v4 = vadd.f32 %v4061_v21, %v1632_v41  ;;  %v2426_v44 = vpop.f32.mrb[22].mxu0  ;;  %2498 = vmatprep.mubr.f32.mxu1 %v1701_v40 }
 0x3f2   : > { %v1635_v45 = vmul.f32 %v2426_v44, %v4059_v19  ;;  %v1556_v46 = vpop.f32.mrb[23].mxu0  ;;  %2499 = vmatmul.mubr.f32.gmra.mrb[18].mxu1 %v1702_v42  ;;  %v1704_v49 = vmax.f32 %v1672_v43, 0.0 }
 0x3f3   : > { %v1703_v47 = vmax.f32 %v1671_v4, 0.0  ;;  %v1634_v48 = vmul.f32 %v4059_v19, %v1556_v46 }
 0x3f4   : > { %v1674_v50 = vadd.f32 %v4061_v21, %v1635_v45 }
 0x3f5   : > { %v1673_v51 = vadd.f32 %v4061_v21, %v1634_v48  ;;  %v2429_v52 = vpop.f32.mrb[24].mxu0  ;;  %2501 = vmatprep.mubr.f32.mxu1 %v1703_v47 }
 0x3f6   : > { %v1637_v53 = vmul.f32 %v2429_v52, %v4059_v19  ;;  %v1566_v54 = vpop.f32.mrb[25].mxu0  ;;  %2502 = vmatmul.mubr.f32.gmra.mrb[20].mxu1 %v1704_v49  ;;  %v1706_v57 = vmax.f32 %v1674_v50, 0.0 }
 0x3f7   : > { %v1705_v55 = vmax.f32 %v1673_v51, 0.0  ;;  %v1636_v56 = vmul.f32 %v4059_v19, %v1566_v54 }
 0x3f8   : > { %v1676_v58 = vadd.f32 %v4061_v21, %v1637_v53 }
 0x3f9   : > { %v1675_v59 = vadd.f32 %v4061_v21, %v1636_v56  ;;  %v2432_v60 = vpop.f32.mrb[26].mxu0  ;;  %2504 = vmatprep.mubr.f32.mxu1 %v1705_v55 }
 0x3fa   : > { %v1639_v61 = vmul.f32 %v2432_v60, %v4059_v19  ;;  %v1576_v62 = vpop.f32.mrb[27].mxu0  ;;  %2505 = vmatmul.mubr.f32.gmra.mrb[22].mxu1 %v1706_v57  ;;  %v1708_v1 = vmax.f32 %v1676_v58, 0.0 }
 0x3fb   : > { %v1707_v63 = vmax.f32 %v1675_v59, 0.0  ;;  %v1638_v0 = vmul.f32 %v4059_v19, %v1576_v62 }
 0x3fc   : > { %v1678_v2 = vadd.f32 %v4061_v21, %v1639_v61 }
 0x3fd   : > { %v1677_v3 = vadd.f32 %v4061_v21, %v1638_v0  ;;  %v2435_v5 = vpop.f32.mrb[28].mxu0  ;;  %2507 = vmatprep.mubr.f32.mxu1 %v1707_v63 }
 0x3fe   : > { %v1641_v6 = vmul.f32 %v2435_v5, %v4059_v19  ;;  %v1586_v7 = vpop.f32.mrb[29].mxu0  ;;  %2508 = vmatmul.mubr.f32.gmra.mrb[24].mxu1 %v1708_v1  ;;  %v1710_v10 = vmax.f32 %v1678_v2, 0.0 }
 0x3ff   : > { %v1709_v8 = vmax.f32 %v1677_v3, 0.0  ;;  %v1640_v9 = vmul.f32 %v4059_v19, %v1586_v7 }
 0x400   : > { %v1680_v11 = vadd.f32 %v4061_v21, %v1641_v6 }
 0x401   : > { %v1679_v12 = vadd.f32 %v4061_v21, %v1640_v9  ;;  %v2438_v13 = vpop.f32.mrb[30].mxu0  ;;  %2510 = vmatprep.mubr.f32.mxu1 %v1709_v8 }
 0x402   : > { %v1643_v14 = vmul.f32 %v2438_v13, %v4059_v19  ;;  %v1596_v15 = vpop.f32.mrb[31].mxu0  ;;  %2511 = vmatmul.mubr.f32.gmra.mrb[26].mxu1 %v1710_v10  ;;  %v1712_v18 = vmax.f32 %v1680_v11, 0.0 }
 0x403   : > { %v1711_v16 = vmax.f32 %v1679_v12, 0.0  ;;  %v1642_v17 = vmul.f32 %v4059_v19, %v1596_v15 }
 0x404   : > { %v1682_v20 = vadd.f32 %v4061_v21, %v1643_v14 }
 0x405   : > { %v1681_v22 = vadd.f32 %v4061_v21, %v1642_v17  ;;  %2513 = vmatprep.mubr.f32.mxu1 %v1711_v16 }
 0x406   : > { %2514 = vmatmul.mubr.f32.gmra.mrb[28].mxu1 %v1712_v18  ;;  %v1714_v24 = vmax.f32 %v1682_v20, 0.0 }
 0x407   : > { %v1713_v23 = vmax.f32 %v1681_v22, 0.0 }
 0x409   : > { %2516 = vmatprep.mubr.f32.mxu1 %v1713_v23 }
 0x40a   : > { %2517 = vmatmul.mubr.f32.gmra.mrb[30].mxu1 %v1714_v24 }
 0x4a1   : > { %v2473_v26 = vpop.f32.mrb[0].mxu1 }
 0x4a2   : > { %v1810_v27 = vadd.f32 %v2473_v26, %v4127_v25  ;;  %v1804_v19 = vpop.f32.mrb[1].mxu1 }
 0x4a3   : > { %v1805_v28 = vadd.f32 %v4127_v25, %v1804_v19 }
 0x4a4   : > { %v1964_v29 = vmax.f32 %v1810_v27, 0.0 }
 0x4a5   : > { %v1963_v30 = vmax.f32 %v1805_v28, 0.0  ;;  %v2476_v21 = vpop.f32.mrb[2].mxu1 }
 0x4a6   : > { %1996 = vst [vmem:[%s3799_s11 + $0x8] sm:$0xff] %v1964_v29  ;;  %v1820_v31 = vadd.f32 %v2476_v21, %v4127_v25  ;;  %v1814_v32 = vpop.f32.mrb[3].mxu1 }
 0x4a7   : > { %1995 = vst [vmem:[%s3799_s11] sm:$0xff] %v1963_v30  ;;  %v1815_v33 = vadd.f32 %v4127_v25, %v1814_v32 }
 0x4a8   : > { %v1966_v34 = vmax.f32 %v1820_v31, 0.0 }
 0x4a9   : > { %v1965_v35 = vmax.f32 %v1815_v33, 0.0  ;;  %v2479_v36 = vpop.f32.mrb[4].mxu1 }
 0x4aa   : > { %1998 = vst [vmem:[%s3799_s11 + $0x18] sm:$0xff] %v1966_v34  ;;  %v1830_v37 = vadd.f32 %v2479_v36, %v4127_v25  ;;  %v1824_v38 = vpop.f32.mrb[5].mxu1 }
 0x4ab   : > { %1997 = vst [vmem:[%s3799_s11 + $0x10] sm:$0xff] %v1965_v35  ;;  %v1825_v39 = vadd.f32 %v4127_v25, %v1824_v38 }
 0x4ac   : > { %v1968_v40 = vmax.f32 %v1830_v37, 0.0 }
 0x4ad   : > { %v1967_v41 = vmax.f32 %v1825_v39, 0.0  ;;  %v2482_v42 = vpop.f32.mrb[6].mxu1 }
 0x4ae   : > { %2000 = vst [vmem:[%s3799_s11 + $0x28] sm:$0xff] %v1968_v40  ;;  %v1840_v43 = vadd.f32 %v2482_v42, %v4127_v25  ;;  %v1834_v4 = vpop.f32.mrb[7].mxu1 }
 0x4af   : > { %1999 = vst [vmem:[%s3799_s11 + $0x20] sm:$0xff] %v1967_v41  ;;  %v1835_v44 = vadd.f32 %v4127_v25, %v1834_v4 }
 0x4b0   : > { %v1970_v45 = vmax.f32 %v1840_v43, 0.0 }
 0x4b1   : > { %v1969_v46 = vmax.f32 %v1835_v44, 0.0  ;;  %v2485_v47 = vpop.f32.mrb[8].mxu1 }
 0x4b2   : > { %2002 = vst [vmem:[%s3799_s11 + $0x38] sm:$0xff] %v1970_v45  ;;  %v1850_v48 = vadd.f32 %v2485_v47, %v4127_v25  ;;  %v1844_v49 = vpop.f32.mrb[9].mxu1 }
 0x4b3   : > { %2001 = vst [vmem:[%s3799_s11 + $0x30] sm:$0xff] %v1969_v46  ;;  %v1845_v50 = vadd.f32 %v4127_v25, %v1844_v49 }
 0x4b4   : > { %v1972_v51 = vmax.f32 %v1850_v48, 0.0 }
 0x4b5   : > { %v1971_v52 = vmax.f32 %v1845_v50, 0.0  ;;  %v2488_v53 = vpop.f32.mrb[10].mxu1 }
 0x4b6   : > { %2004 = vst [vmem:[%s3799_s11 + $0x48] sm:$0xff] %v1972_v51  ;;  %v1860_v54 = vadd.f32 %v2488_v53, %v4127_v25  ;;  %v1854_v55 = vpop.f32.mrb[11].mxu1 }
 0x4b7   : > { %2003 = vst [vmem:[%s3799_s11 + $0x40] sm:$0xff] %v1971_v52  ;;  %v1855_v56 = vadd.f32 %v4127_v25, %v1854_v55 }
 0x4b8   : > { %v1974_v57 = vmax.f32 %v1860_v54, 0.0 }
 0x4b9   : > { %v1973_v58 = vmax.f32 %v1855_v56, 0.0  ;;  %v2491_v59 = vpop.f32.mrb[12].mxu1 }
 0x4ba   : > { %2006 = vst [vmem:[%s3799_s11 + $0x58] sm:$0xff] %v1974_v57  ;;  %v1870_v60 = vadd.f32 %v2491_v59, %v4127_v25  ;;  %v1864_v61 = vpop.f32.mrb[13].mxu1 }
 0x4bb   : > { %2005 = vst [vmem:[%s3799_s11 + $0x50] sm:$0xff] %v1973_v58  ;;  %v1865_v62 = vadd.f32 %v4127_v25, %v1864_v61 }
 0x4bc   : > { %v1976_v63 = vmax.f32 %v1870_v60, 0.0 }
 0x4bd   : > { %v1975_v0 = vmax.f32 %v1865_v62, 0.0  ;;  %v2494_v1 = vpop.f32.mrb[14].mxu1 }
 0x4be   : > { %2008 = vst [vmem:[%s3799_s11 + $0x68] sm:$0xff] %v1976_v63  ;;  %v1880_v2 = vadd.f32 %v2494_v1, %v4127_v25  ;;  %v1874_v3 = vpop.f32.mrb[15].mxu1 }
 0x4bf   : > { %2007 = vst [vmem:[%s3799_s11 + $0x60] sm:$0xff] %v1975_v0  ;;  %v1875_v5 = vadd.f32 %v4127_v25, %v1874_v3 }
 0x4c0   : > { %v1978_v6 = vmax.f32 %v1880_v2, 0.0 }
 0x4c1   : > { %v1977_v7 = vmax.f32 %v1875_v5, 0.0  ;;  %v2497_v8 = vpop.f32.mrb[16].mxu1 }
 0x4c2   : > { %2010 = vst [vmem:[%s3799_s11 + $0x78] sm:$0xff] %v1978_v6  ;;  %v1890_v9 = vadd.f32 %v2497_v8, %v4127_v25  ;;  %v1884_v10 = vpop.f32.mrb[17].mxu1 }
 0x4c3   : > { %2009 = vst [vmem:[%s3799_s11 + $0x70] sm:$0xff] %v1977_v7  ;;  %v1885_v11 = vadd.f32 %v4127_v25, %v1884_v10 }
 0x4c4   : > { %v1980_v12 = vmax.f32 %v1890_v9, 0.0 }
 0x4c5   : > { %v1979_v13 = vmax.f32 %v1885_v11, 0.0  ;;  %v2500_v14 = vpop.f32.mrb[18].mxu1 }
 0x4c6   : > { %2012 = vst [vmem:[%s3799_s11 + $0x88] sm:$0xff] %v1980_v12  ;;  %v1900_v15 = vadd.f32 %v2500_v14, %v4127_v25  ;;  %v1894_v16 = vpop.f32.mrb[19].mxu1 }
 0x4c7   : > { %2011 = vst [vmem:[%s3799_s11 + $0x80] sm:$0xff] %v1979_v13  ;;  %v1895_v17 = vadd.f32 %v4127_v25, %v1894_v16 }
 0x4c8   : > { %v1982_v18 = vmax.f32 %v1900_v15, 0.0 }
 0x4c9   : > { %v1981_v20 = vmax.f32 %v1895_v17, 0.0  ;;  %v2503_v22 = vpop.f32.mrb[20].mxu1 }
 0x4ca   : > { %2014 = vst [vmem:[%s3799_s11 + $0x98] sm:$0xff] %v1982_v18  ;;  %v1910_v23 = vadd.f32 %v2503_v22, %v4127_v25  ;;  %v1904_v24 = vpop.f32.mrb[21].mxu1 }
 0x4cb   : > { %2013 = vst [vmem:[%s3799_s11 + $0x90] sm:$0xff] %v1981_v20  ;;  %v1905_v26 = vadd.f32 %v4127_v25, %v1904_v24 }
 0x4cc   : > { %v1984_v27 = vmax.f32 %v1910_v23, 0.0 }
 0x4cd   : > { %v1983_v19 = vmax.f32 %v1905_v26, 0.0  ;;  %v2506_v28 = vpop.f32.mrb[22].mxu1 }
 0x4ce   : > { %2016 = vst [vmem:[%s3799_s11 + $0xa8] sm:$0xff] %v1984_v27  ;;  %v1920_v29 = vadd.f32 %v2506_v28, %v4127_v25  ;;  %v1914_v30 = vpop.f32.mrb[23].mxu1 }
 0x4cf   : > { %2015 = vst [vmem:[%s3799_s11 + $0xa0] sm:$0xff] %v1983_v19  ;;  %v1915_v21 = vadd.f32 %v4127_v25, %v1914_v30 }
 0x4d0   : > { %v1986_v31 = vmax.f32 %v1920_v29, 0.0 }
 0x4d1   : > { %v1985_v32 = vmax.f32 %v1915_v21, 0.0  ;;  %v2509_v33 = vpop.f32.mrb[24].mxu1 }
 0x4d2   : > { %2018 = vst [vmem:[%s3799_s11 + $0xb8] sm:$0xff] %v1986_v31  ;;  %v1930_v34 = vadd.f32 %v2509_v33, %v4127_v25  ;;  %v1924_v35 = vpop.f32.mrb[25].mxu1 }
 0x4d3   : > { %2017 = vst [vmem:[%s3799_s11 + $0xb0] sm:$0xff] %v1985_v32  ;;  %v1925_v36 = vadd.f32 %v4127_v25, %v1924_v35 }
 0x4d4   : > { %v1988_v37 = vmax.f32 %v1930_v34, 0.0 }
 0x4d5   : > { %v1987_v38 = vmax.f32 %v1925_v36, 0.0  ;;  %v2512_v39 = vpop.f32.mrb[26].mxu1 }
 0x4d6   : > { %2020 = vst [vmem:[%s3799_s11 + $0xc8] sm:$0xff] %v1988_v37  ;;  %v1940_v40 = vadd.f32 %v2512_v39, %v4127_v25  ;;  %v1934_v41 = vpop.f32.mrb[27].mxu1 }
 0x4d7   : > { %2019 = vst [vmem:[%s3799_s11 + $0xc0] sm:$0xff] %v1987_v38  ;;  %v1935_v42 = vadd.f32 %v4127_v25, %v1934_v41 }
 0x4d8   : > { %v1990_v43 = vmax.f32 %v1940_v40, 0.0 }
 0x4d9   : > { %v1989_v4 = vmax.f32 %v1935_v42, 0.0  ;;  %v2515_v44 = vpop.f32.mrb[28].mxu1 }
 0x4da   : > { %2022 = vst [vmem:[%s3799_s11 + $0xd8] sm:$0xff] %v1990_v43  ;;  %v1950_v45 = vadd.f32 %v2515_v44, %v4127_v25  ;;  %v1944_v46 = vpop.f32.mrb[29].mxu1 }
 0x4db   : > { %2021 = vst [vmem:[%s3799_s11 + $0xd0] sm:$0xff] %v1989_v4  ;;  %v1945_v47 = vadd.f32 %v4127_v25, %v1944_v46 }
 0x4dc   : > { %v1992_v48 = vmax.f32 %v1950_v45, 0.0 }
 0x4dd   : > { %v1991_v49 = vmax.f32 %v1945_v47, 0.0  ;;  %v2518_v50 = vpop.f32.mrb[30].mxu1 }
 0x4de   : > { %2024 = vst [vmem:[%s3799_s11 + $0xe8] sm:$0xff] %v1992_v48  ;;  %v1960_v51 = vadd.f32 %v2518_v50, %v4127_v25  ;;  %v1954_v52 = vpop.f32.mrb[31].mxu1 }
 0x4df   : > { %2023 = vst [vmem:[%s3799_s11 + $0xe0] sm:$0xff] %v1991_v49  ;;  %v1955_v53 = vadd.f32 %v4127_v25, %v1954_v52 }
 0x4e0   : > { %v1994_v54 = vmax.f32 %v1960_v51, 0.0 }
 0x4e1   : > { %v1993_v55 = vmax.f32 %v1955_v53, 0.0 }
 0x4e2   : > { %2026 = vst [vmem:[%s3799_s11 + $0xf8] sm:$0xff] %v1994_v54 }
 0x4e3   : > { %2025 = vst [vmem:[%s3799_s11 + $0xf0] sm:$0xff] %v1993_v55 }
 0x4e4 PF: > { %s4381_s15 = sld [smem:[#allocation30_spill]]  ;;  %s4383_s5 = sld [smem:[#allocation41_spill]] }
 0x4e5   : > { %s2041_s24 = sshll.u32 %s3799_s11, 4  ;;  %s4204_s20 = scalar_lea.sflag [#allocation5], %s420_s27  ;;  %s4200_s24 = int_to_ptr.vmem [resolvable:$true] %s2041_s24 }
 0x4e6   : > { %s3105_s30 = scalar_lea.vmem %s4200_s24, 4096  ;;  %p4384_p4 = scmp.ne.s32.totalorder %s4361_s22, 0 }
 0x4e7   : > { %p3106_p2 = scmp.ne.s32.totalorder %s4200_s24, %s3105_s30  ;;  %s3288_s0 = smov [#allocation17]  }
 0x4e8   : > { %s3109_s25 = sshll.u32 %s3288_s0, 4  ;;  %s3110_s25 = int_to_ptr.vmem [resolvable:$false] %s3109_s25 }
 0x4e9   : > { %p3107_p12 = pnand %p3106_p2, %p4384_p4  ;;  %s3111_s3 = scalar_lea.vmem %s3110_s25, 8192 }
 0x4ea   : > { %s2262_s29 = sshll.u32 %s4381_s15, 12  ;;  %p3112_p10 = scmp.lt.s32.totalorder %s4200_s24, %s3110_s25 }
 0x4eb   : > { %s4197_s14 = scalar_lea.hbm %s4383_s5, %s2262_s29  ;;  %p3108_p9 = pneg %p3107_p12 }
 0x4ec   : > { %p3113_p1 = scmp.lt.s32.totalorder %s3111_s3, %s3105_s30 }
 0x4ee   : > { %p3114_p13 = por %p3113_p1, %p3112_p10 }
 0x4f0   : > { %p3115_p5 = pnand %p3114_p13, %p3108_p9 }
 0x4f2   : > { %3118 = shalt.err (!%p3115_p5)
}
 0x4f3   : > { %s3119_s27 = scalar_lea.hbm %s4197_s14, 4096  ;;  %s3123_s19 = scalar_lea.hbm %s4383_s5, 16384 }
 0x4f4   : > { %p3120_p11 = scmp.ne.s32.totalorder %s4197_s14, %s3119_s27  ;;  %p3124_p7 = scmp.lt.u32.totalorder %s4197_s14, %s4383_s5 }
 0x4f5   : > { %p3125_p6 = scmp.lt.u32.totalorder %s3123_s19, %s3119_s27  ;;  %p3127_p2 = scmp.lt.u32.totalorder %s3119_s27, %s4197_s14 }
 0x4f6   : > { %p3121_p0 = pnand %p3120_p11, %p4384_p4 }
 0x4f7   : > { %p3126_p3 = por %p3125_p6, %p3124_p7 }
 0x4f8   : > { %p3122_p8 = pneg %p3121_p0 }
 0x4f9   : > { %p3128_p12 = por %p3127_p2, %p3126_p3 }
 0x4fb   : > { %p3129_p9 = pnand %p3128_p12, %p3122_p8 }
 0x4fd   : > { %3132 = shalt.err (!%p3129_p9)
}
 0x4fe   : > { %s3289_s29 = smov 128   ;;  %s3290_s21 = smov 8  }
 0x4ff   : > { %2705 = dma.vmem_to_hbm [thread:$0]  (%p4384_p4), %s4200_s24, 4096, %s4197_s14, %s4204_s20, %s3289_s29, %s3289_s29, %s3290_s21  }
 0x500 PF: > { %s4385_s10 = sld [smem:[#allocation25_spill]]  ;;  %p2748_p10 = scmp.ge.s32.totalorder %s3271_s18, 2 }
 0x501   : > { %p4386_p1 = scmp.ne.s32.totalorder %s4362_s1, 0 }
 0x503   : > { %p2734_p13 = pnand %p2748_p10, %p4386_p1 }
 0x506   : > { %s2056_s30 = sand.u32 1, %s4385_s10  }
 0x507   : > { %s2057_s0 = scalar_lea.sflag [#allocation5], %s2056_s30 }
 0x508   : > { %3214 = dma.done.wait (!%p2734_p13), %s2057_s0, 4096  }
 0x509   : > { %3216 = vsyncadd (!%p2734_p13), %s2057_s0, 4294963200  ;;  %s30_s18 = sadd.s32 1, %s3271_s18   ;;  %s4388_s27 = sld [smem:[#allocation26_spill]] }
 0x50a   : > { %p4233_p5 = scmp.ge.s32.totalorder %s30_s18, 10   ;;  %s4389_s28 = sld [smem:[#allocation27_spill]] }
 0x50b   : > { %s4390_s22 = sld [smem:[#allocation28_spill]]  ;;  %s4391_s10 = sld [smem:[#allocation34_spill]] }
 0x50c   : > { %s4392_s1 = sld [smem:[#allocation32_spill]]  ;;  %s4393_s24 = sld [smem:[#allocation33_spill]] }
 0x50d   : > { %s4394_s29 = smov %s3694_s26  ;;  %s4395_s30 = smov %s3235_s9 }
 0x50e   : > { %s4397_s11 = smov %s3247_s12  ;;  %s4398_s12 = smov %s3251_s13 }
 0x50f   : > { %s4399_s13 = smov %s3631_s23  ;;  %s4400_s14 = smov %s3263_s16 }
 0x510   : > { %s4401_s15 = smov %s3267_s17  ;;  %29 = sbr.rel (!%p4233_p5) target bundleno = 22 (0x16), region = 149 }
 0x511   : > { %s4396_s9 = smov %s4390_s22 }
 0x512   : > { %s4402_s16 = smov %s4392_s1  ;;  %s4403_s17 = smov %s4393_s24 }
 0x517   :  { %2062 = vsyncpa [#allocation4], 1 }
 0x518   :  { %2064 = vsyncpa [#allocation4 + $0x1], 1 }
 0x519   :  { %2065 = vsyncpa [#allocation7], 1 }
 0x51a   :  { %2067 = vsyncpa [#allocation7 + $0x1], 1 }
 0x51b   :  { %2068 = vsyncpa [#allocation10], 1 }
 0x51c   :  { %2069 = vsyncpa [#allocation13], 1 }
 0x51d   :  { %2070 = vsyncpa [#allocation16], 1 }
 0x51e   :  { %2071 = vsyncpa [#allocation5], 1 }
 0x51f   :  { %2073 = vsyncpa [#allocation5 + $0x1], 1 }

</bundles_post_ra>
